<compile_context>
chip_gen: v7x
topology: tpu7x:2x2x1
jax: 0.10.0
libtpu: 0.0.40
codegen_flags: <defaults>
</compile_context>

<pallas_src>
import jax
import jax.numpy as jnp
from jax.experimental import pallas as pl
from jax.experimental.pallas import tpu as pltpu

N = 64            # number of graph nodes per graph
F_IN = 512        # input feature dim
C_OUT = 256       # GATConv output channels (heads=1)
H_A = 128         # densea out
H_1 = 64          # dense1 out
H_2 = 32          # dense2 out
Z_RAW = 3         # dense3 out
NEG_SLOPE_ATT = 0.2   # leaky_relu slope inside GAT attention (PyG default)


def fused_gat_mlp_cdist_kernel(x_ref, adjb_ref, w_gat_ref, att_ref, b_gat_ref,
                               wa_ref, ba_ref, w1_ref, b1_ref,
                               w2_ref, b2_ref, w3_ref, b3_ref, out_ref):
    f32 = jnp.float32
    bf16 = jnp.bfloat16
    # Shared ones-vector: reused by the attention row-broadcast and the cdist
    # epilogue (JAX does not CSE broadcast_in_dim, so build it once).
    ones = jnp.ones((N, 1), f32)

    def row_bcast(col):
        # [N,1] -> [N,N] with M[i, j] = col[j]; rank-1 outer product on the
        # MXU avoids an XLU sublane->lane transpose.
        return jax.lax.dot_general(ones, col, (((1,), (1,)), ((), ())),
                                   preferred_element_type=f32)

    # ----------------------- GATConv (heads=1) --------------------------
    h = jnp.dot(x_ref[0], w_gat_ref[...], preferred_element_type=f32)   # [N,256] f32
    h_bf = h.astype(bf16)       # single bf16 copy shared by the two attention matmuls
    # attention logits on the MXU: att[:, 0] = att_src, att[:, 1] = att_dst
    a = jnp.dot(h_bf, att_ref[...], preferred_element_type=f32)         # [N,2]
    a_src = a[:, 0:1]
    a_dst = a[:, 1:2]
    # scores[i (dst), j (src)] = leaky_relu(a_dst[i] + a_src[j]) + adj_bias[i, j]
    scores = a_dst + row_bcast(a_src)                                   # [N,N]
    scores = jnp.where(scores > 0, scores, NEG_SLOPE_ATT * scores) + adjb_ref[0]
    # softmax over source nodes (incoming edges of each dst node).  Self-loops
    # guarantee the row max comes from an unmasked entry, so masked entries
    # underflow to exactly 0 after exp and denom >= 1 (no guard needed).
    m = jnp.max(scores, axis=-1, keepdims=True)
    e = jnp.exp(scores - m)
    attn = e * pl.reciprocal(jnp.sum(e, axis=-1, keepdims=True), approx=True)
    h = (jnp.dot(attn.astype(bf16), h_bf, preferred_element_type=f32)
         + b_gat_ref[...])                                               # [N,256]

    # ----------------------- MLP head ----------------------------------
    # TODO(synk): Dropout(p=0.4) implemented as identity (eval mode); torch
    # RNG-matched training-mode masking is not reproducible here.
    y = jnp.maximum(h, 0.0)
    y = jnp.maximum(
        jnp.dot(y.astype(bf16), wa_ref[...], preferred_element_type=f32)
        + ba_ref[...], 0.0)
    y = jnp.maximum(
        jnp.dot(y.astype(bf16), w1_ref[...], preferred_element_type=f32)
        + b1_ref[...], 0.0)
    y = jnp.maximum(
        jnp.dot(y.astype(bf16), w2_ref[...], preferred_element_type=f32)
        + b2_ref[...], 0.0)
    z = (jnp.dot(y.astype(bf16), w3_ref[...], preferred_element_type=f32)
         + b3_ref[...])                                                  # [N,3] f32

    # ----------------------- cdist(z, z, p=2) ---------------------------
    # Direct 3-coordinate form: 3 tiny VPU passes, no fp32 Gram matmul and no
    # sq + sq^T - 2*gram cancellation.
    d2 = jnp.zeros((N, N), f32)
    for k in range(Z_RAW):
        zk = z[:, k:k + 1]                     # [N,1]
        diff = zk - row_bcast(zk)              # diff[i,j] = z[i,k] - z[j,k]
        d2 = d2 + diff * diff
    out_ref[0] = jnp.sqrt(d2)


@jax.jit
def gat_net_forward(x, adj, params):
    """x: [B, N, F_IN] f32, adj: [B, N, N] {0,1} mask (adj[b, dst, src])."""
    (w_gat, att, b_gat, wa, ba, w1, b1, w2, b2, w3, b3) = params
    B = x.shape[0]
    # Fold the adjacency mask into an additive bias once per call.
    adj_bias = jnp.where(adj > 0, jnp.float32(0.0), jnp.float32(-1e30))

    def batch_spec(shape):
        nd = len(shape)
        return pl.BlockSpec((1,) + tuple(shape[1:]),
                            lambda b, _nd=nd: (b,) + (0,) * (_nd - 1))

    def weight_spec(shape):
        nd = len(shape)
        return pl.BlockSpec(tuple(shape), lambda b, _nd=nd: (0,) * _nd)

    weights = (w_gat, att, b_gat, wa, ba, w1, b1, w2, b2, w3, b3)
    inputs = (x.astype(jnp.bfloat16), adj_bias) + weights
    in_specs = ([batch_spec(inputs[0].shape), batch_spec(adj_bias.shape)]
                + [weight_spec(w.shape) for w in weights])

    return pl.pallas_call(
        fused_gat_mlp_cdist_kernel,
        out_shape=jax.ShapeDtypeStruct((B, N, N), jnp.float32),
        grid=(B,),
        in_specs=in_specs,
        out_specs=pl.BlockSpec((1, N, N), lambda b: (b, 0, 0)),
        compiler_params=pltpu.CompilerParams(
            dimension_semantics=("parallel",)),   # v7x: both TCs split the batch
    )(*inputs)


def make_params(key):
    ks = jax.random.split(key, 10)
    bf16 = jnp.bfloat16

    def init(k, shape, fan_in):
        return jax.random.normal(k, shape, jnp.float32) / jnp.sqrt(fan_in)

    # GATConv(512, 256), heads=1; weights stored [in, out] so kernels do x @ W.
    w_gat = init(ks[0], (F_IN, C_OUT), F_IN).astype(bf16)
    att = init(ks[1], (C_OUT, 2), C_OUT).astype(bf16)   # col 0: att_src, col 1: att_dst
    b_gat = jnp.zeros((1, C_OUT), jnp.float32)
    wa = init(ks[2], (C_OUT, H_A), C_OUT).astype(bf16)
    ba = init(ks[3], (1, H_A), C_OUT)
    w1 = init(ks[4], (H_A, H_1), H_A).astype(bf16)
    b1 = init(ks[5], (1, H_1), H_A)
    w2 = init(ks[6], (H_1, H_2), H_1).astype(bf16)
    b2 = init(ks[7], (1, H_2), H_1)
    w3 = init(ks[8], (H_2, Z_RAW), H_2).astype(bf16)
    b3 = init(ks[9], (1, Z_RAW), H_2)
    return (w_gat, att, b_gat, wa, ba, w1, b1, w2, b2, w3, b3)


def make_graph(key, batch):
    """Deterministic example graphs: ring (both directions) + random edges."""
    ring = jnp.arange(N, dtype=jnp.int32)
    ring_next = (ring + 1) % N
    edge_indices, adjs = [], []
    for _ in range(batch):
        k1, k2, key = jax.random.split(key, 3)
        rnd_src = jax.random.randint(k1, (64,), 0, N, dtype=jnp.int32)
        rnd_dst = jax.random.randint(k2, (64,), 0, N, dtype=jnp.int32)
        src = jnp.concatenate([ring, ring_next, rnd_src])
        dst = jnp.concatenate([ring_next, ring, rnd_dst])
        edge_indices.append(jnp.stack([src, dst]))           # [2, E]
        # dense adjacency mask adj[dst, src] = 1, plus self loops (PyG default).
        adj = jnp.zeros((N, N), jnp.float32).at[dst, src].set(1.0)
        adj = adj.at[jnp.arange(N), jnp.arange(N)].set(1.0)
        adjs.append(adj)
    return jnp.stack(edge_indices), jnp.stack(adjs)


if __name__ == "__main__":
    key = jax.random.PRNGKey(0)
    k_x, k_p, k_g = jax.random.split(key, 3)

    B = 2
    x = jax.random.normal(k_x, (B, N, F_IN), jnp.float32)
    params = make_params(k_p)
    edge_index, adj = make_graph(k_g, B)

    out = gat_net_forward(x, adj, params)
    out = jax.block_until_ready(out)

    assert out.shape == (B, N, N)
    assert bool(jnp.all(jnp.isfinite(out)))
    print("KERNEL_OK")
</pallas_src>

<mosaic_0001>
module attributes {stable_mosaic.version = 11 : i64} {
  func.func @fused_gat_mlp_cdist_kernel(%arg0: i32, %arg1: memref<1x64x512xbf16, #tpu.memory_space<vmem>>, %arg2: memref<1x64x64xf32, #tpu.memory_space<vmem>>, %arg3: memref<512x256xbf16, #tpu.memory_space<vmem>>, %arg4: memref<256x2xbf16, #tpu.memory_space<vmem>>, %arg5: memref<1x256xf32, #tpu.memory_space<vmem>>, %arg6: memref<256x128xbf16, #tpu.memory_space<vmem>>, %arg7: memref<1x128xf32, #tpu.memory_space<vmem>>, %arg8: memref<128x64xbf16, #tpu.memory_space<vmem>>, %arg9: memref<1x64xf32, #tpu.memory_space<vmem>>, %arg10: memref<64x32xbf16, #tpu.memory_space<vmem>>, %arg11: memref<1x32xf32, #tpu.memory_space<vmem>>, %arg12: memref<32x3xbf16, #tpu.memory_space<vmem>>, %arg13: memref<1x3xf32, #tpu.memory_space<vmem>>, %arg14: memref<1x64x64xf32, #tpu.memory_space<vmem>>) attributes {dimension_semantics = [#tpu.dimension_semantics<parallel>], iteration_bounds = array<i64: 2>, scalar_prefetch = 0 : i64, scratch_operands = 0 : i64, tpu.core_type = #tpu.core_type<tc>, window_params = [{transform_indices = @transform_0, window_bounds = array<i64: 1, 64, 512>}, {transform_indices = @transform_1, window_bounds = array<i64: 1, 64, 64>}, {pipeline_mode = #tpu.pipeline_mode<synchronous>, transform_indices = @transform_2, window_bounds = array<i64: 512, 256>}, {pipeline_mode = #tpu.pipeline_mode<synchronous>, transform_indices = @transform_3, window_bounds = array<i64: 256, 2>}, {pipeline_mode = #tpu.pipeline_mode<synchronous>, transform_indices = @transform_4, window_bounds = array<i64: 1, 256>}, {pipeline_mode = #tpu.pipeline_mode<synchronous>, transform_indices = @transform_5, window_bounds = array<i64: 256, 128>}, {pipeline_mode = #tpu.pipeline_mode<synchronous>, transform_indices = @transform_6, window_bounds = array<i64: 1, 128>}, {pipeline_mode = #tpu.pipeline_mode<synchronous>, transform_indices = @transform_7, window_bounds = array<i64: 128, 64>}, {pipeline_mode = #tpu.pipeline_mode<synchronous>, transform_indices = @transform_8, window_bounds = array<i64: 1, 64>}, {pipeline_mode = #tpu.pipeline_mode<synchronous>, transform_indices = @transform_9, window_bounds = array<i64: 64, 32>}, {pipeline_mode = #tpu.pipeline_mode<synchronous>, transform_indices = @transform_10, window_bounds = array<i64: 1, 32>}, {pipeline_mode = #tpu.pipeline_mode<synchronous>, transform_indices = @transform_11, window_bounds = array<i64: 32, 3>}, {pipeline_mode = #tpu.pipeline_mode<synchronous>, transform_indices = @transform_12, window_bounds = array<i64: 1, 3>}, {transform_indices = @transform_13, window_bounds = array<i64: 1, 64, 64>}]} {
    %cst = arith.constant 1.000000e+00 : f32
    %0 = vector.broadcast %cst : f32 to vector<64x1xf32>
    %c0 = arith.constant 0 : index
    %c0_0 = arith.constant 0 : index
    %c0_1 = arith.constant 0 : index
    %1 = vector.load %arg1[%c0, %c0_0, %c0_1] : memref<1x64x512xbf16, #tpu.memory_space<vmem>>, vector<1x64x512xbf16>
    %2 = vector.shape_cast %1 : vector<1x64x512xbf16> to vector<64x512xbf16>
    %c0_2 = arith.constant 0 : index
    %c0_3 = arith.constant 0 : index
    %3 = vector.load %arg3[%c0_2, %c0_3] : memref<512x256xbf16, #tpu.memory_space<vmem>>, vector<512x256xbf16>
    %cst_4 = arith.constant dense<0.000000e+00> : vector<64x256xf32>
    %4 = tpu.matmul %2, %3, %cst_4 {dimension_numbers = #tpu.dot_dimension_numbers<[1], [0], [0], [1], [0, 0, 1, 1], [], []>} : vector<64x512xbf16>, vector<512x256xbf16>, vector<64x256xf32> -> vector<64x256xf32>
    %5 = arith.truncf %4 : vector<64x256xf32> to vector<64x256xbf16>
    %c0_5 = arith.constant 0 : index
    %c0_6 = arith.constant 0 : index
    %6 = vector.load %arg4[%c0_5, %c0_6] : memref<256x2xbf16, #tpu.memory_space<vmem>>, vector<256x2xbf16>
    %cst_7 = arith.constant dense<0.000000e+00> : vector<64x2xf32>
    %7 = tpu.matmul %5, %6, %cst_7 {dimension_numbers = #tpu.dot_dimension_numbers<[1], [0], [0], [1], [0, 0, 1, 1], [], []>} : vector<64x256xbf16>, vector<256x2xbf16>, vector<64x2xf32> -> vector<64x2xf32>
    %8 = vector.extract_strided_slice %7 {offsets = [0, 0], sizes = [64, 1], strides = [1, 1]} : vector<64x2xf32> to vector<64x1xf32>
    %9 = vector.extract_strided_slice %7 {offsets = [0, 1], sizes = [64, 1], strides = [1, 1]} : vector<64x2xf32> to vector<64x1xf32>
    %cst_8 = arith.constant dense<0.000000e+00> : vector<64x64xf32>
    %10 = tpu.matmul %0, %8, %cst_8 {dimension_numbers = #tpu.dot_dimension_numbers<[1], [1], [0], [0], [0, 0, 1, 0], [], []>} : vector<64x1xf32>, vector<64x1xf32>, vector<64x64xf32> -> vector<64x64xf32>
    %11 = vector.broadcast %9 : vector<64x1xf32> to vector<64x64xf32>
    %12 = arith.addf %11, %10 : vector<64x64xf32>
    %cst_9 = arith.constant 0.000000e+00 : f32
    %13 = vector.broadcast %cst_9 : f32 to vector<64x64xf32>
    %14 = arith.cmpf ogt, %12, %13 : vector<64x64xf32>
    %cst_10 = arith.constant 2.000000e-01 : f32
    %15 = vector.broadcast %cst_10 : f32 to vector<64x64xf32>
    %16 = arith.mulf %15, %12 : vector<64x64xf32>
    %17 = arith.select %14, %12, %16 : vector<64x64xi1>, vector<64x64xf32>
    %c0_11 = arith.constant 0 : index
    %c0_12 = arith.constant 0 : index
    %c0_13 = arith.constant 0 : index
    %18 = vector.load %arg2[%c0_11, %c0_12, %c0_13] : memref<1x64x64xf32, #tpu.memory_space<vmem>>, vector<1x64x64xf32>
    %19 = vector.shape_cast %18 : vector<1x64x64xf32> to vector<64x64xf32>
    %20 = arith.addf %17, %19 : vector<64x64xf32>
    %cst_14 = arith.constant dense<0xFF800000> : vector<64xf32>
    %21 = vector.multi_reduction <maximumf>, %20, %cst_14 [1] : vector<64x64xf32> to vector<64xf32>
    %22 = vector.shape_cast %21 : vector<64xf32> to vector<64x1xf32>
    %23 = vector.broadcast %22 : vector<64x1xf32> to vector<64x64xf32>
    %24 = arith.subf %20, %23 : vector<64x64xf32>
    %25 = math.exp %24 : vector<64x64xf32>
    %cst_15 = arith.constant dense<0.000000e+00> : vector<64xf32>
    %26 = vector.multi_reduction <add>, %25, %cst_15 [1] : vector<64x64xf32> to vector<64xf32>
    %27 = vector.shape_cast %26 : vector<64xf32> to vector<64x1xf32>
    %28 = tpu.reciprocal %27 {approx = true} : vector<64x1xf32> -> vector<64x1xf32>
    %29 = vector.broadcast %28 : vector<64x1xf32> to vector<64x64xf32>
    %30 = arith.mulf %25, %29 : vector<64x64xf32>
    %31 = arith.truncf %30 : vector<64x64xf32> to vector<64x64xbf16>
    %cst_16 = arith.constant dense<0.000000e+00> : vector<64x256xf32>
    %32 = tpu.matmul %31, %5, %cst_16 {dimension_numbers = #tpu.dot_dimension_numbers<[1], [0], [0], [1], [0, 0, 1, 1], [], []>} : vector<64x64xbf16>, vector<64x256xbf16>, vector<64x256xf32> -> vector<64x256xf32>
    %c0_17 = arith.constant 0 : index
    %c0_18 = arith.constant 0 : index
    %33 = vector.load %arg5[%c0_17, %c0_18] : memref<1x256xf32, #tpu.memory_space<vmem>>, vector<1x256xf32>
    %34 = vector.broadcast %33 : vector<1x256xf32> to vector<64x256xf32>
    %35 = arith.addf %32, %34 : vector<64x256xf32>
    %cst_19 = arith.constant 0.000000e+00 : f32
    %36 = vector.broadcast %cst_19 : f32 to vector<64x256xf32>
    %37 = arith.maximumf %35, %36 : vector<64x256xf32>
    %38 = arith.truncf %37 : vector<64x256xf32> to vector<64x256xbf16>
    %c0_20 = arith.constant 0 : index
    %c0_21 = arith.constant 0 : index
    %39 = vector.load %arg6[%c0_20, %c0_21] : memref<256x128xbf16, #tpu.memory_space<vmem>>, vector<256x128xbf16>
    %cst_22 = arith.constant dense<0.000000e+00> : vector<64x128xf32>
    %40 = tpu.matmul %38, %39, %cst_22 {dimension_numbers = #tpu.dot_dimension_numbers<[1], [0], [0], [1], [0, 0, 1, 1], [], []>} : vector<64x256xbf16>, vector<256x128xbf16>, vector<64x128xf32> -> vector<64x128xf32>
    %c0_23 = arith.constant 0 : index
    %c0_24 = arith.constant 0 : index
    %41 = vector.load %arg7[%c0_23, %c0_24] : memref<1x128xf32, #tpu.memory_space<vmem>>, vector<1x128xf32>
    %42 = vector.broadcast %41 : vector<1x128xf32> to vector<64x128xf32>
    %43 = arith.addf %40, %42 : vector<64x128xf32>
    %cst_25 = arith.constant 0.000000e+00 : f32
    %44 = vector.broadcast %cst_25 : f32 to vector<64x128xf32>
    %45 = arith.maximumf %43, %44 : vector<64x128xf32>
    %46 = arith.truncf %45 : vector<64x128xf32> to vector<64x128xbf16>
    %c0_26 = arith.constant 0 : index
    %c0_27 = arith.constant 0 : index
    %47 = vector.load %arg8[%c0_26, %c0_27] : memref<128x64xbf16, #tpu.memory_space<vmem>>, vector<128x64xbf16>
    %cst_28 = arith.constant dense<0.000000e+00> : vector<64x64xf32>
    %48 = tpu.matmul %46, %47, %cst_28 {dimension_numbers = #tpu.dot_dimension_numbers<[1], [0], [0], [1], [0, 0, 1, 1], [], []>} : vector<64x128xbf16>, vector<128x64xbf16>, vector<64x64xf32> -> vector<64x64xf32>
    %c0_29 = arith.constant 0 : index
    %c0_30 = arith.constant 0 : index
    %49 = vector.load %arg9[%c0_29, %c0_30] : memref<1x64xf32, #tpu.memory_space<vmem>>, vector<1x64xf32>
    %50 = vector.broadcast %49 : vector<1x64xf32> to vector<64x64xf32>
    %51 = arith.addf %48, %50 : vector<64x64xf32>
    %cst_31 = arith.constant 0.000000e+00 : f32
    %52 = vector.broadcast %cst_31 : f32 to vector<64x64xf32>
    %53 = arith.maximumf %51, %52 : vector<64x64xf32>
    %54 = arith.truncf %53 : vector<64x64xf32> to vector<64x64xbf16>
    %c0_32 = arith.constant 0 : index
    %c0_33 = arith.constant 0 : index
    %55 = vector.load %arg10[%c0_32, %c0_33] : memref<64x32xbf16, #tpu.memory_space<vmem>>, vector<64x32xbf16>
    %cst_34 = arith.constant dense<0.000000e+00> : vector<64x32xf32>
    %56 = tpu.matmul %54, %55, %cst_34 {dimension_numbers = #tpu.dot_dimension_numbers<[1], [0], [0], [1], [0, 0, 1, 1], [], []>} : vector<64x64xbf16>, vector<64x32xbf16>, vector<64x32xf32> -> vector<64x32xf32>
    %c0_35 = arith.constant 0 : index
    %c0_36 = arith.constant 0 : index
    %57 = vector.load %arg11[%c0_35, %c0_36] : memref<1x32xf32, #tpu.memory_space<vmem>>, vector<1x32xf32>
    %58 = vector.broadcast %57 : vector<1x32xf32> to vector<64x32xf32>
    %59 = arith.addf %56, %58 : vector<64x32xf32>
    %cst_37 = arith.constant 0.000000e+00 : f32
    %60 = vector.broadcast %cst_37 : f32 to vector<64x32xf32>
    %61 = arith.maximumf %59, %60 : vector<64x32xf32>
    %62 = arith.truncf %61 : vector<64x32xf32> to vector<64x32xbf16>
    %c0_38 = arith.constant 0 : index
    %c0_39 = arith.constant 0 : index
    %63 = vector.load %arg12[%c0_38, %c0_39] : memref<32x3xbf16, #tpu.memory_space<vmem>>, vector<32x3xbf16>
    %cst_40 = arith.constant dense<0.000000e+00> : vector<64x3xf32>
    %64 = tpu.matmul %62, %63, %cst_40 {dimension_numbers = #tpu.dot_dimension_numbers<[1], [0], [0], [1], [0, 0, 1, 1], [], []>} : vector<64x32xbf16>, vector<32x3xbf16>, vector<64x3xf32> -> vector<64x3xf32>
    %c0_41 = arith.constant 0 : index
    %c0_42 = arith.constant 0 : index
    %65 = vector.load %arg13[%c0_41, %c0_42] : memref<1x3xf32, #tpu.memory_space<vmem>>, vector<1x3xf32>
    %66 = vector.broadcast %65 : vector<1x3xf32> to vector<64x3xf32>
    %67 = arith.addf %64, %66 : vector<64x3xf32>
    %cst_43 = arith.constant 0.000000e+00 : f32
    %68 = vector.broadcast %cst_43 : f32 to vector<64x64xf32>
    %69 = vector.extract_strided_slice %67 {offsets = [0, 0], sizes = [64, 1], strides = [1, 1]} : vector<64x3xf32> to vector<64x1xf32>
    %cst_44 = arith.constant dense<0.000000e+00> : vector<64x64xf32>
    %70 = tpu.matmul %0, %69, %cst_44 {dimension_numbers = #tpu.dot_dimension_numbers<[1], [1], [0], [0], [0, 0, 1, 0], [], []>} : vector<64x1xf32>, vector<64x1xf32>, vector<64x64xf32> -> vector<64x64xf32>
    %71 = vector.broadcast %69 : vector<64x1xf32> to vector<64x64xf32>
    %72 = arith.subf %71, %70 : vector<64x64xf32>
    %73 = arith.mulf %72, %72 : vector<64x64xf32>
    %74 = arith.addf %68, %73 : vector<64x64xf32>
    %75 = vector.extract_strided_slice %67 {offsets = [0, 1], sizes = [64, 1], strides = [1, 1]} : vector<64x3xf32> to vector<64x1xf32>
    %cst_45 = arith.constant dense<0.000000e+00> : vector<64x64xf32>
    %76 = tpu.matmul %0, %75, %cst_45 {dimension_numbers = #tpu.dot_dimension_numbers<[1], [1], [0], [0], [0, 0, 1, 0], [], []>} : vector<64x1xf32>, vector<64x1xf32>, vector<64x64xf32> -> vector<64x64xf32>
    %77 = vector.broadcast %75 : vector<64x1xf32> to vector<64x64xf32>
    %78 = arith.subf %77, %76 : vector<64x64xf32>
    %79 = arith.mulf %78, %78 : vector<64x64xf32>
    %80 = arith.addf %74, %79 : vector<64x64xf32>
    %81 = vector.extract_strided_slice %67 {offsets = [0, 2], sizes = [64, 1], strides = [1, 1]} : vector<64x3xf32> to vector<64x1xf32>
    %cst_46 = arith.constant dense<0.000000e+00> : vector<64x64xf32>
    %82 = tpu.matmul %0, %81, %cst_46 {dimension_numbers = #tpu.dot_dimension_numbers<[1], [1], [0], [0], [0, 0, 1, 0], [], []>} : vector<64x1xf32>, vector<64x1xf32>, vector<64x64xf32> -> vector<64x64xf32>
    %83 = vector.broadcast %81 : vector<64x1xf32> to vector<64x64xf32>
    %84 = arith.subf %83, %82 : vector<64x64xf32>
    %85 = arith.mulf %84, %84 : vector<64x64xf32>
    %86 = arith.addf %80, %85 : vector<64x64xf32>
    %87 = math.sqrt %86 : vector<64x64xf32>
    %c0_47 = arith.constant 0 : index
    %c0_48 = arith.constant 0 : index
    %c0_49 = arith.constant 0 : index
    %88 = vector.load %arg14[%c0_47, %c0_48, %c0_49] : memref<1x64x64xf32, #tpu.memory_space<vmem>>, vector<1x64x64xf32>
    %89 = vector.shape_cast %88 : vector<1x64x64xf32> to vector<64x64xf32>
    %90 = vector.shape_cast %87 : vector<64x64xf32> to vector<1x64x64xf32>
    tpu.vector_store %arg14[%c0_47, %c0_48, %c0_49], %90 {strides = array<i32>} : memref<1x64x64xf32, #tpu.memory_space<vmem>>, vector<1x64x64xf32>,
    return
  }
  func.func @transform_0(%arg0: i32) -> (i32, i32, i32) {
    %c0_i32 = arith.constant 0 : i32
    %c0_i32_0 = arith.constant 0 : i32
    %c0_i32_1 = arith.constant 0 : i32
    return %arg0, %c0_i32, %c0_i32_0 : i32, i32, i32
  }
  func.func @transform_1(%arg0: i32) -> (i32, i32, i32) {
    %c0_i32 = arith.constant 0 : i32
    %c0_i32_0 = arith.constant 0 : i32
    %c0_i32_1 = arith.constant 0 : i32
    return %arg0, %c0_i32, %c0_i32_0 : i32, i32, i32
  }
  func.func @transform_2(%arg0: i32) -> (i32, i32) {
    %c0_i32 = arith.constant 0 : i32
    %c0_i32_0 = arith.constant 0 : i32
    %c0_i32_1 = arith.constant 0 : i32
    return %c0_i32, %c0_i32_0 : i32, i32
  }
  func.func @transform_3(%arg0: i32) -> (i32, i32) {
    %c0_i32 = arith.constant 0 : i32
    %c0_i32_0 = arith.constant 0 : i32
    %c0_i32_1 = arith.constant 0 : i32
    return %c0_i32, %c0_i32_0 : i32, i32
  }
  func.func @transform_4(%arg0: i32) -> (i32, i32) {
    %c0_i32 = arith.constant 0 : i32
    %c0_i32_0 = arith.constant 0 : i32
    %c0_i32_1 = arith.constant 0 : i32
    return %c0_i32, %c0_i32_0 : i32, i32
  }
  func.func @transform_5(%arg0: i32) -> (i32, i32) {
    %c0_i32 = arith.constant 0 : i32
    %c0_i32_0 = arith.constant 0 : i32
    %c0_i32_1 = arith.constant 0 : i32
    return %c0_i32, %c0_i32_0 : i32, i32
  }
  func.func @transform_6(%arg0: i32) -> (i32, i32) {
    %c0_i32 = arith.constant 0 : i32
    %c0_i32_0 = arith.constant 0 : i32
    %c0_i32_1 = arith.constant 0 : i32
    return %c0_i32, %c0_i32_0 : i32, i32
  }
  func.func @transform_7(%arg0: i32) -> (i32, i32) {
    %c0_i32 = arith.constant 0 : i32
    %c0_i32_0 = arith.constant 0 : i32
    %c0_i32_1 = arith.constant 0 : i32
    return %c0_i32, %c0_i32_0 : i32, i32
  }
  func.func @transform_8(%arg0: i32) -> (i32, i32) {
    %c0_i32 = arith.constant 0 : i32
    %c0_i32_0 = arith.constant 0 : i32
    %c0_i32_1 = arith.constant 0 : i32
    return %c0_i32, %c0_i32_0 : i32, i32
  }
  func.func @transform_9(%arg0: i32) -> (i32, i32) {
    %c0_i32 = arith.constant 0 : i32
    %c0_i32_0 = arith.constant 0 : i32
    %c0_i32_1 = arith.constant 0 : i32
    return %c0_i32, %c0_i32_0 : i32, i32
  }
  func.func @transform_10(%arg0: i32) -> (i32, i32) {
    %c0_i32 = arith.constant 0 : i32
    %c0_i32_0 = arith.constant 0 : i32
    %c0_i32_1 = arith.constant 0 : i32
    return %c0_i32, %c0_i32_0 : i32, i32
  }
  func.func @transform_11(%arg0: i32) -> (i32, i32) {
    %c0_i32 = arith.constant 0 : i32
    %c0_i32_0 = arith.constant 0 : i32
    %c0_i32_1 = arith.constant 0 : i32
    return %c0_i32, %c0_i32_0 : i32, i32
  }
  func.func @transform_12(%arg0: i32) -> (i32, i32) {
    %c0_i32 = arith.constant 0 : i32
    %c0_i32_0 = arith.constant 0 : i32
    %c0_i32_1 = arith.constant 0 : i32
    return %c0_i32, %c0_i32_0 : i32, i32
  }
  func.func @transform_13(%arg0: i32) -> (i32, i32, i32) {
    %c0_i32 = arith.constant 0 : i32
    %c0_i32_0 = arith.constant 0 : i32
    %c0_i32_1 = arith.constant 0 : i32
    return %arg0, %c0_i32, %c0_i32_0 : i32, i32, i32
  }
}

</mosaic_0001>

<bundles_post_ra>
// kernel: gat_net_forward.1
= control target key start
LH: loop header
LB: loop body
LE: loop exit
PB: predicated region body
PF: predicated region fallthrough
CT: control target
= control target key end

     0   :  { %s4957_s0 = inlined_call_operand.vmem [shape: bf16[2,64,512], index: 0, kind: input, shape index: {}]   ;;  %s4958_s1 = inlined_call_operand.vmem [shape: f32[2,64,64], index: 1, kind: input, shape index: {}]   ;;  %s4959_s2 = inlined_call_operand.vmem [shape: bf16[512,256], index: 2, kind: input, shape index: {}]   ;;  %s4960_s3 = inlined_call_operand.vmem [shape: bf16[256,2], index: 3, kind: input, shape index: {}]   ;;  %s4961_s4 = inlined_call_operand.vmem [shape: f32[1,256], index: 4, kind: input, shape index: {}]   ;;  %s4962_s5 = inlined_call_operand.vmem [shape: bf16[256,128], index: 5, kind: input, shape index: {}]   ;;  %s4963_s6 = inlined_call_operand.vmem [shape: f32[1,128], index: 6, kind: input, shape index: {}]   ;;  %s4964_s7 = inlined_call_operand.vmem [shape: bf16[128,64], index: 7, kind: input, shape index: {}]   ;;  %s4965_s8 = inlined_call_operand.vmem [shape: f32[1,64], index: 8, kind: input, shape index: {}]   ;;  %s4966_s9 = inlined_call_operand.vmem [shape: bf16[64,32], index: 9, kind: input, shape index: {}]   ;;  %s4967_s10 = inlined_call_operand.vmem [shape: f32[1,32], index: 10, kind: input, shape index: {}]   ;;  %s4968_s11 = inlined_call_operand.vmem [shape: bf16[32,3], index: 11, kind: input, shape index: {}]   ;;  %s4969_s12 = inlined_call_operand.vmem [shape: f32[1,3], index: 12, kind: input, shape index: {}]   ;;  %s4970_s13 = inlined_call_operand.hbm [shape: f32[2,64,64], index: 13, kind: output, shape index: {}]  }
   0x1   :  { %4974 = sst [smem:[#allocation8_spill]] %s4957_s0 }
   0x2   :  { %18 = vsyncpa [#allocation3], 0 }
   0x3   :  { %20 = vsyncpa [#allocation3 + $0x1], 0  ;;  %s4149_s25 = smov 0   ;;  %s4151_s26 = smov 0  }
   0x4   :  { %s4153_s27 = smov 0   ;;  %s4155_s28 = smov 0  }
   0x5 LB: > { %4975 = sst [smem:[#allocation5_spill]] %s4064_s27  ;;  %s4170_s29 = sadd.s32 4294967295, %s4068_s28   ;;  %s4068_s28 = sphi %s4155_s28, %s4983_s28   ;;  %s4064_s27 = sphi %s4153_s27, %s4985_s27   ;;  %s4060_s26 = sphi %s4151_s26, %s4987_s26   ;;  %s4056_s25 = sphi %s4149_s25, %s4986_s25  }
   0x6   : > { %s3026_s30 = sadd.s32 4294967294, %s4068_s28   ;;  %s4174_s14 = sadd.s32 1, %s4068_s28  }
   0x7   : > { %4976 = sst [smem:[#allocation6_spill]] %s4174_s14  ;;  %s316_s15 = sadd.s32 1, %s4064_s27 }
   0x8   : > { %s313_s16 = ssub.s32 %s4068_s28, %s4174_s14  ;;  %p326_p0 = scmp.ne.s32.totalorder %s4064_s27, %s4060_s26 }
   0x9   : > { %p314_p1 = scmp.eq.s32.totalorder %s313_s16, 0  ;;  %p327_p2 = scmp.eq.s32.totalorder %s4170_s29, 1 }
   0xa   : > { %p332_p3 = scmp.ne.s32.totalorder %s4060_s26, %s4056_s25  ;;  %p333_p4 = scmp.eq.s32.totalorder %s3026_s30, 1 }
   0xb   : > { %s4185_s17 = scalar_select %p314_p1, %s4064_s27, %s316_s15  }
   0xc   : > { %p4187_p5 = por %p327_p2, %p326_p0  ;;  %p4191_p6 = por %p333_p4, %p332_p3 }
   0xd   : > { %4977 = sst [smem:[#allocation7_spill]] %s4185_s17  ;;  %p3029_p7 = scmp.ge.s32.totalorder %s4068_s28, 1 }
   0xe   : > { %p400_p8 = scmp.lt.s32.totalorder %s4068_s28, 3 }
  0x10   : > { %p401_p9 = pnand %p3029_p7, %p400_p8 }
  0x11   : > { %v3792_v0 = vld [vmem:[%s4959_s2 + $0x4] ss:$8 sps:$4 sm:$0xff] (!%p401_p9)   ;;  %v3794_v1 = vld [vmem:[%s4959_s2] ss:$8 sps:$4 sm:$0xff] (!%p401_p9)   ;;  %v3795_v2 = vld [vmem:[%s4959_s2 + $0x14] ss:$8 sps:$4 sm:$0xff] (!%p401_p9)  }
  0x12   : > { %404 = sbr.rel (%p401_p9) target bundleno = 2685 (0xa7d), region = 72  ;;  %940 = vmatprep.subr.bf16.mxu0 (!%p401_p9), %v3792_v0  ;;  %v3797_v3 = vld [vmem:[%s4959_s2 + $0x10] ss:$8 sps:$4 sm:$0xff] (!%p401_p9)   ;;  %v3798_v4 = vld [vmem:[%s4959_s2 + $0x24] ss:$8 sps:$4 sm:$0xff] (!%p401_p9)   ;;  %p449_p10 = scmp.lt.s32.totalorder (!%p401_p9), %s4170_s29, 1 }
  0x13   : > { %941 = vmatpush1.bf16.msra.mxu0 (!%p401_p9), %v3794_v1  ;;  %v3800_v5 = vld [vmem:[%s4959_s2 + $0x20] ss:$8 sps:$4 sm:$0xff] (!%p401_p9)   ;;  %v3801_v6 = vld [vmem:[%s4959_s2 + $0x34] ss:$8 sps:$4 sm:$0xff] (!%p401_p9)   ;;  %v3803_v7 = vld [vmem:[%s4959_s2 + $0x30] ss:$8 sps:$4 sm:$0xff] (!%p401_p9)  }
  0x14   : > { %942 = vmatprep.subr.bf16.mxu0 (!%p401_p9), %v3795_v2  ;;  %v3804_v8 = vld [vmem:[%s4959_s2 + $0x44] ss:$8 sps:$4 sm:$0xff] (!%p401_p9)   ;;  %v3806_v9 = vld [vmem:[%s4959_s2 + $0x40] ss:$8 sps:$4 sm:$0xff] (!%p401_p9)   ;;  %v3807_v10 = vld [vmem:[%s4959_s2 + $0x54] ss:$8 sps:$4 sm:$0xff] (!%p401_p9)  }
  0x15   : > { %v3809_v11 = vld [vmem:[%s4959_s2 + $0x50] ss:$8 sps:$4 sm:$0xff] (!%p401_p9)   ;;  %s4980_s0 = sld [smem:[#allocation8_spill]] (!%p401_p9)  ;;  %v3810_v12 = vld [vmem:[%s4959_s2 + $0x64] ss:$8 sps:$4 sm:$0xff] (!%p401_p9)   ;;  %vm1287_vm0 = vcmask (!%p401_p9), 7168  }
  0x16   : > { %v3812_v14 = vld [vmem:[%s4959_s2 + $0x60] ss:$8 sps:$4 sm:$0xff] (!%p401_p9)   ;;  %v3813_v15 = vld [vmem:[%s4959_s2 + $0x74] ss:$8 sps:$4 sm:$0xff] (!%p401_p9)   ;;  %v3815_v16 = vld [vmem:[%s4959_s2 + $0x70] ss:$8 sps:$4 sm:$0xff] (!%p401_p9)  }
  0x17   : > { %943 = vmatpush1.bf16.msra.mxu0 (!%p401_p9), %v3797_v3  ;;  %v3816_v17 = vld [vmem:[%s4959_s2 + $0x84] ss:$8 sps:$4 sm:$0xff] (!%p401_p9)   ;;  %v3818_v18 = vld [vmem:[%s4959_s2 + $0x80] ss:$8 sps:$4 sm:$0xff] (!%p401_p9)   ;;  %v3819_v19 = vld [vmem:[%s4959_s2 + $0x94] ss:$8 sps:$4 sm:$0xff] (!%p401_p9)  }
  0x18   : > { %944 = vmatprep.subr.bf16.mxu0 (!%p401_p9), %v3798_v4  ;;  %v3821_v20 = vld [vmem:[%s4959_s2 + $0x90] ss:$8 sps:$4 sm:$0xff] (!%p401_p9)   ;;  %v3822_v21 = vld [vmem:[%s4959_s2 + $0xa4] ss:$8 sps:$4 sm:$0xff] (!%p401_p9)   ;;  %v3824_v22 = vld [vmem:[%s4959_s2 + $0xa0] ss:$8 sps:$4 sm:$0xff] (!%p401_p9)  }
  0x19   : > { %s4226_s16 = scalar_select %p449_p10, %s4170_s29, 1  ;;  %v3825_v23 = vld [vmem:[%s4959_s2 + $0xb4] ss:$8 sps:$4 sm:$0xff]   ;;  %v3827_v24 = vld [vmem:[%s4959_s2 + $0xb0] ss:$8 sps:$4 sm:$0xff]   ;;  %v3912_v32 = vld [vmem:[%s4960_s3 + $0x40] sm:$0xff]  }
  0x1a   : > { %v3828_v25 = vld [vmem:[%s4959_s2 + $0xc4] ss:$8 sps:$4 sm:$0xff]   ;;  %v3830_v26 = vld [vmem:[%s4959_s2 + $0xc0] ss:$8 sps:$4 sm:$0xff]   ;;  %v3831_v27 = vld [vmem:[%s4959_s2 + $0xd4] ss:$8 sps:$4 sm:$0xff]   ;;  %3249 = vmatprep.subr.bf16.mxu1 %v3912_v32 }
  0x1b   : > { %945 = vmatpush1.bf16.msra.mxu0 %v3800_v5  ;;  %s3246_s23 = sshll.u32 %s4226_s16, 7  ;;  %v3833_v28 = vld [vmem:[%s4959_s2 + $0xd0] ss:$8 sps:$4 sm:$0xff]   ;;  %v3834_v29 = vld [vmem:[%s4959_s2 + $0xe4] ss:$8 sps:$4 sm:$0xff]   ;;  %vm4495_vm1 = vmpackc.low %vm1287_vm0, %vm1287_vm0  ;;  %vm1500_vm4 = vcmask 523264  }
  0x1c   : > { %946 = vmatprep.subr.bf16.mxu0 %v3801_v6  ;;  %s4241_s14 = scalar_lea.vmem %s4980_s0, %s3246_s23  ;;  %v3836_v30 = vld [vmem:[%s4959_s2 + $0xe0] ss:$8 sps:$4 sm:$0xff]   ;;  %v3837_v31 = vld [vmem:[%s4959_s2 + $0xf4] ss:$8 sps:$4 sm:$0xff]   ;;  %v3839_v37 = vld [vmem:[%s4959_s2 + $0xf0] ss:$8 sps:$4 sm:$0xff]  }
  0x1d   : > { %v3842_v13 = vld [vmem:[%s4241_s14 + $0x4] ss:$16 sps:$4 sm:$0xff]   ;;  %v3914_v34 = vld [vmem:[%s4960_s3 + $0x48] sm:$0xff]   ;;  %v3840_v38 = vld [vmem:[%s4241_s14] ss:$16 sps:$4 sm:$0xff]   ;;  %vm2225_vm11 = vcmask 261120  }
  0x1e   : > { %972 = vmatprep.mubr.bf16.mxu0 %v3842_v13  ;;  %v3913_v33 = vld [vmem:[%s4960_s3] sm:$0xff]   ;;  %v3915_v35 = vld [vmem:[%s4960_s3 + $0x8] sm:$0xff]   ;;  %v3916_v36 = vld [vmem:[%s4960_s3 + $0x50] sm:$0xff]   ;;  %s4073_s15 = smov 126   ;;  %s3248_s27 = sshll.u32 %s4170_s29, 10 }
  0x1f   : > { %947 = vmatpush1.bf16.msra.mxu0 %v3803_v7  ;;  %3250 = vmatpush3.bf16.msra.mxu1 %v3913_v33  ;;  %v3845_v39 = vld [vmem:[%s4959_s2 + $0x104] ss:$8 sps:$4 sm:$0xff]   ;;  %v3843_v40 = vld [vmem:[%s4959_s2 + $0x100] ss:$8 sps:$4 sm:$0xff]   ;;  %v3917_v41 = vld [vmem:[%s4960_s3 + $0x10] sm:$0xff]   ;;  %s4908_s30 = scalar_lea.hbm %s4970_s13, %s3248_s27  ;;  %s4076_s23 = smov [#allocation2]  }
  0x20   : > { %948 = vmatprep.subr.bf16.mxu0 %v3804_v8  ;;  %3251 = vmatprep.subr.bf16.mxu1 %v3914_v34  ;;  %v3918_v42 = vld [vmem:[%s4960_s3 + $0x58] sm:$0xff]   ;;  %v3873_v43 = vld [vmem:[%s4241_s14 + $0x24] ss:$16 sps:$4 sm:$0xff]   ;;  %v3875_v50 = vld [vmem:[%s4241_s14 + $0x20] ss:$16 sps:$4 sm:$0xff]  }
  0x21   : > { %v3848_v44 = vld [vmem:[%s4959_s2 + $0x114] ss:$8 sps:$4 sm:$0xff]   ;;  %v3846_v45 = vld [vmem:[%s4959_s2 + $0x110] ss:$8 sps:$4 sm:$0xff]   ;;  %v3851_v47 = vld [vmem:[%s4959_s2 + $0x124] ss:$8 sps:$4 sm:$0xff]  }
  0x22   : > { %v3919_v46 = vld [vmem:[%s4960_s3 + $0x18] sm:$0xff]   ;;  %v3920_v48 = vld [vmem:[%s4960_s3 + $0x60] sm:$0xff]   ;;  %v3922_v51 = vld [vmem:[%s4960_s3 + $0x68] sm:$0xff]  }
  0x23   : > { %949 = vmatpush1.bf16.msra.mxu0 %v3806_v9  ;;  %3252 = vmatpush3.bf16.msra.mxu1 %v3915_v35  ;;  %v3921_v49 = vld [vmem:[%s4960_s3 + $0x20] sm:$0xff]   ;;  %v3854_v54 = vld [vmem:[%s4959_s2 + $0x134] ss:$8 sps:$4 sm:$0xff]   ;;  %v3923_v55 = vld [vmem:[%s4960_s3 + $0x28] sm:$0xff]  }
  0x24   : > { %950 = vmatprep.subr.bf16.mxu0 %v3807_v10  ;;  %3253 = vmatprep.subr.bf16.mxu1 %v3916_v36  ;;  %v3849_v52 = vld [vmem:[%s4959_s2 + $0x120] ss:$8 sps:$4 sm:$0xff]   ;;  %v3882_v53 = vld [vmem:[%s4241_s14 + $0x44] ss:$16 sps:$4 sm:$0xff]   ;;  %v3852_v57 = vld [vmem:[%s4959_s2 + $0x130] ss:$8 sps:$4 sm:$0xff]  }
  0x25   : > { %v3924_v56 = vld [vmem:[%s4960_s3 + $0x70] sm:$0xff]   ;;  %v3857_v58 = vld [vmem:[%s4959_s2 + $0x144] ss:$8 sps:$4 sm:$0xff]   ;;  %v3855_v60 = vld [vmem:[%s4959_s2 + $0x140] ss:$8 sps:$4 sm:$0xff]  }
  0x26   : > { %v3884_v59 = vld [vmem:[%s4241_s14 + $0x40] ss:$16 sps:$4 sm:$0xff]   ;;  %v3891_v61 = vld [vmem:[%s4241_s14 + $0x64] ss:$16 sps:$4 sm:$0xff]   ;;  %v3902_v3 = vld [vmem:[%s4241_s14 + $0xc] ss:$16 sps:$4 sm:$0xff]  }
  0x27   : > { %951 = vmatpush1.bf16.msra.mxu0 %v3809_v11  ;;  %3254 = vmatpush3.bf16.msra.mxu1 %v3917_v41  ;;  %v3860_v62 = vld [vmem:[%s4959_s2 + $0x154] ss:$8 sps:$4 sm:$0xff]   ;;  %v3858_v63 = vld [vmem:[%s4959_s2 + $0x150] ss:$8 sps:$4 sm:$0xff]   ;;  %v3863_v0 = vld [vmem:[%s4959_s2 + $0x164] ss:$8 sps:$4 sm:$0xff]  }
  0x28   : > { %952 = vmatprep.subr.bf16.mxu0 %v3810_v12  ;;  %3255 = vmatprep.subr.bf16.mxu1 %v3918_v42  ;;  %v3893_v1 = vld [vmem:[%s4241_s14 + $0x60] ss:$16 sps:$4 sm:$0xff]   ;;  %v3866_v4 = vld [vmem:[%s4959_s2 + $0x174] ss:$8 sps:$4 sm:$0xff]   ;;  %v3869_v6 = vld [vmem:[%s4959_s2 + $0x184] ss:$8 sps:$4 sm:$0xff]  }
  0x29   : > { %v3861_v2 = vld [vmem:[%s4959_s2 + $0x160] ss:$8 sps:$4 sm:$0xff]   ;;  %v3864_v5 = vld [vmem:[%s4959_s2 + $0x170] ss:$8 sps:$4 sm:$0xff]   ;;  %v3872_v8 = vld [vmem:[%s4959_s2 + $0x194] ss:$8 sps:$4 sm:$0xff]  }
  0x2a   : > { %v3867_v7 = vld [vmem:[%s4959_s2 + $0x180] ss:$8 sps:$4 sm:$0xff]   ;;  %v3870_v9 = vld [vmem:[%s4959_s2 + $0x190] ss:$8 sps:$4 sm:$0xff]   ;;  %v3878_v10 = vld [vmem:[%s4959_s2 + $0x1a4] ss:$8 sps:$4 sm:$0xff]  }
  0x2b   : > { %953 = vmatpush1.bf16.msra.mxu0 %v3812_v14  ;;  %3256 = vmatpush3.bf16.msra.mxu1 %v3919_v46  ;;  %v3876_v11 = vld [vmem:[%s4959_s2 + $0x1a0] ss:$8 sps:$4 sm:$0xff]   ;;  %v3881_v12 = vld [vmem:[%s4959_s2 + $0x1b4] ss:$8 sps:$4 sm:$0xff]   ;;  %v3879_v13 = vld [vmem:[%s4959_s2 + $0x1b0] ss:$8 sps:$4 sm:$0xff]  }
  0x2c   : > { %954 = vmatprep.subr.bf16.mxu0 %v3813_v15  ;;  %3257 = vmatprep.subr.bf16.mxu1 %v3920_v48  ;;  %v3887_v14 = vld [vmem:[%s4959_s2 + $0x1c4] ss:$8 sps:$4 sm:$0xff]   ;;  %v3885_v15 = vld [vmem:[%s4959_s2 + $0x1c0] ss:$8 sps:$4 sm:$0xff]  }
  0x2f   : > { %955 = vmatpush1.bf16.msra.mxu0 %v3815_v16  ;;  %3258 = vmatpush3.bf16.msra.mxu1 %v3921_v49  ;;  %v3890_v16 = vld [vmem:[%s4959_s2 + $0x1d4] ss:$8 sps:$4 sm:$0xff]  }
  0x30   : > { %956 = vmatprep.subr.bf16.mxu0 %v3816_v17  ;;  %3259 = vmatprep.subr.bf16.mxu1 %v3922_v51  ;;  %v3888_v17 = vld [vmem:[%s4959_s2 + $0x1d0] ss:$8 sps:$4 sm:$0xff]  }
  0x33   : > { %957 = vmatpush1.bf16.msra.mxu0 %v3818_v18  ;;  %3260 = vmatpush3.bf16.msra.mxu1 %v3923_v55  ;;  %v3896_v18 = vld [vmem:[%s4959_s2 + $0x1e4] ss:$8 sps:$4 sm:$0xff]  }
  0x34   : > { %958 = vmatprep.subr.bf16.mxu0 %v3819_v19  ;;  %3261 = vmatprep.subr.bf16.mxu1 %v3924_v56  ;;  %v3894_v19 = vld [vmem:[%s4959_s2 + $0x1e0] ss:$8 sps:$4 sm:$0xff]   ;;  %v4070_v56 = vmov 1  }
  0x35   : > { %3742 = vset.pattern.permute.xlu0 %v4070_v56  ;;  %3743 = vset.pattern.permute.xlu1 %v4070_v56 }
  0x37   : > { %959 = vmatpush1.bf16.msra.mxu0 %v3821_v20  ;;  %v3899_v20 = vld [vmem:[%s4959_s2 + $0x1f4] ss:$8 sps:$4 sm:$0xff]  }
  0x38   : > { %960 = vmatprep.subr.bf16.mxu0 %v3822_v21  ;;  %v3897_v21 = vld [vmem:[%s4959_s2 + $0x1f0] ss:$8 sps:$4 sm:$0xff]  }
  0x3b   : > { %961 = vmatpush1.bf16.msra.mxu0 %v3824_v22  ;;  %v3900_v22 = vld [vmem:[%s4241_s14 + $0x8] ss:$16 sps:$4 sm:$0xff]  }
  0x3c   : > { %962 = vmatprep.subr.bf16.mxu0 %v3825_v23  ;;  %v3903_v23 = vld [vmem:[%s4241_s14 + $0x2c] ss:$16 sps:$4 sm:$0xff]  }
  0x3f   : > { %963 = vmatpush1.bf16.msra.mxu0 %v3827_v24  ;;  %v3905_v24 = vld [vmem:[%s4241_s14 + $0x28] ss:$16 sps:$4 sm:$0xff]  }
  0x40   : > { %964 = vmatprep.subr.bf16.mxu0 %v3828_v25  ;;  %v3906_v25 = vld [vmem:[%s4241_s14 + $0x4c] ss:$16 sps:$4 sm:$0xff]  }
  0x43   : > { %965 = vmatpush1.bf16.msra.mxu0 %v3830_v26  ;;  %v3908_v26 = vld [vmem:[%s4241_s14 + $0x48] ss:$16 sps:$4 sm:$0xff]  }
  0x44   : > { %966 = vmatprep.subr.bf16.mxu0 %v3831_v27  ;;  %v3909_v27 = vld [vmem:[%s4241_s14 + $0x6c] ss:$16 sps:$4 sm:$0xff]  }
  0x47   : > { %967 = vmatpush1.bf16.msra.mxu0 %v3833_v28  ;;  %v3911_v28 = vld [vmem:[%s4241_s14 + $0x68] ss:$16 sps:$4 sm:$0xff]   ;;  %s3247_s14 = sshll.u32 %s4226_s16, 6  ;;  %s446_s16 = sand.u32 1, %s4060_s26  }
  0x48   : > { %968 = vmatprep.subr.bf16.mxu0 %v3834_v29  ;;  %v3925_v29 = vld [vmem:[%s4960_s3 + $0x30] sm:$0xff]   ;;  %s4541_s17 = scalar_lea.vmem %s4958_s1, %s3247_s14  ;;  %s3030_s20 = sshll.u32 %s446_s16, 6 }
  0x49   : > { %3262 = vmatpush3.bf16.msra.mxu1 %v3925_v29  ;;  %s4877_s21 = scalar_lea.vmem [#allocation2], %s3030_s20  ;;  %s4916_s29 = scalar_lea.sflag [#allocation3], %s446_s16 }
  0x4a   : > { %s2952_s22 = sshll.u32 %s4877_s21, 4  ;;  %s4910_s22 = int_to_ptr.vmem [resolvable:$true] %s2952_s22 }
  0x4b   : > { %969 = vmatpush1.bf16.msra.mxu0 %v3836_v30  ;;  %v3926_v30 = vld [vmem:[%s4960_s3 + $0x78] sm:$0xff]   ;;  %s4006_s14 = scalar_lea.vmem %s4910_s22, 1024 }
  0x4c   : > { %970 = vmatprep.subr.bf16.mxu0 %v3837_v31  ;;  %v3927_v31 = vld [vmem:[%s4960_s3 + $0x38] sm:$0xff]   ;;  %3263 = vmatprep.subr.bf16.mxu1 %v3926_v30  ;;  %p4007_p11 = scmp.ne.s32.totalorder %s4910_s22, %s4006_s14 }
  0x4d   : > { %3264 = vmatpush3.bf16.msra.mxu1 %v3927_v31  ;;  %v1485_v31 = vld [vmem:[%s4541_s17 + $0x8] sm:$0xff] }
  0x4e   : > { %p4008_p12 = pnand %p4007_p11, %p4187_p5 }
  0x4f   : > { %971 = vmatpush1.bf16.msra.mxu0 %v3839_v37 }
  0x50   : > { %1013 = vmatprep.subr.bf16.mxu0 %v3845_v39  ;;  %p4009_p13 = pneg %p4008_p12 }
  0x52   : > { %973 = vmatmul.mubr.bf16.vlgmr.msra.gmra.mrb[0].mxu0 %v3840_v38 }
  0x53   : > { %1014 = vmatpush1.bf16.msra.mxu0 %v3843_v40  ;;  %982 = vmatprep.mubr.bf16.mxu0 %v3873_v43 }
  0x54   : > { %1015 = vmatprep.subr.bf16.mxu0 %v3848_v44 }
  0x57   : > { %1016 = vmatpush1.bf16.msra.mxu0 %v3846_v45 }
  0x58   : > { %1017 = vmatprep.subr.bf16.mxu0 %v3851_v47 }
  0x5a   : > { %983 = vmatmul.mubr.bf16.gmra.mrb[4].mxu0 %v3875_v50 }
  0x5b   : > { %1018 = vmatpush1.bf16.msra.mxu0 %v3849_v52  ;;  %992 = vmatprep.mubr.bf16.mxu0 %v3882_v53 }
  0x5c   : > { %1019 = vmatprep.subr.bf16.mxu0 %v3854_v54 }
  0x5f   : > { %1020 = vmatpush1.bf16.msra.mxu0 %v3852_v57  ;;  %v4071_v57 = vmov 1.0  }
  0x60   : > { %1021 = vmatprep.subr.bf16.mxu0 %v3857_v58 }
  0x62   : > { %993 = vmatmul.mubr.bf16.gmra.mrb[8].mxu0 %v3884_v59 }
  0x63   : > { %1022 = vmatpush1.bf16.msra.mxu0 %v3855_v60  ;;  %1002 = vmatprep.mubr.bf16.mxu0 %v3891_v61 }
  0x64   : > { %1023 = vmatprep.subr.bf16.mxu0 %v3860_v62 }
  0x67   : > { %1024 = vmatpush1.bf16.msra.mxu0 %v3858_v63 }
  0x68   : > { %1025 = vmatprep.subr.bf16.mxu0 %v3863_v0 }
  0x6a   : > { %1003 = vmatmul.mubr.bf16.gmra.mrb[12].mxu0 %v3893_v1 }
  0x6b   : > { %1026 = vmatpush1.bf16.msra.mxu0 %v3861_v2  ;;  %1045 = vmatprep.mubr.bf16.mxu0 %v3902_v3 }
  0x6c   : > { %1027 = vmatprep.subr.bf16.mxu0 %v3866_v4 }
  0x6f   : > { %1028 = vmatpush1.bf16.msra.mxu0 %v3864_v5 }
  0x70   : > { %1029 = vmatprep.subr.bf16.mxu0 %v3869_v6 }
  0x73   : > { %1030 = vmatpush1.bf16.msra.mxu0 %v3867_v7 }
  0x74   : > { %1031 = vmatprep.subr.bf16.mxu0 %v3872_v8 }
  0x77   : > { %1032 = vmatpush1.bf16.msra.mxu0 %v3870_v9 }
  0x78   : > { %1033 = vmatprep.subr.bf16.mxu0 %v3878_v10 }
  0x7b   : > { %1034 = vmatpush1.bf16.msra.mxu0 %v3876_v11 }
  0x7c   : > { %1035 = vmatprep.subr.bf16.mxu0 %v3881_v12 }
  0x7f   : > { %1036 = vmatpush1.bf16.msra.mxu0 %v3879_v13 }
  0x80   : > { %1037 = vmatprep.subr.bf16.mxu0 %v3887_v14 }
  0x83   : > { %1038 = vmatpush1.bf16.msra.mxu0 %v3885_v15 }
  0x84   : > { %1039 = vmatprep.subr.bf16.mxu0 %v3890_v16 }
  0x87   : > { %1040 = vmatpush1.bf16.msra.mxu0 %v3888_v17 }
  0x88   : > { %1041 = vmatprep.subr.bf16.mxu0 %v3896_v18 }
  0x8b   : > { %1042 = vmatpush1.bf16.msra.mxu0 %v3894_v19 }
  0x8c   : > { %1043 = vmatprep.subr.bf16.mxu0 %v3899_v20 }
  0x8f   : > { %1044 = vmatpush1.bf16.msra.mxu0 %v3897_v21 }
  0x92   : > { %1046 = vmatmul.mubr.bf16.vlgmr.msra.gmra.mrb[0].mxu0 %v3900_v22 }
  0x93   : > { %1055 = vmatprep.mubr.bf16.mxu0 %v3903_v23 }
  0x9a   : > { %1056 = vmatmul.mubr.bf16.gmra.mrb[4].mxu0 %v3905_v24 }
  0x9b   : > { %1065 = vmatprep.mubr.bf16.mxu0 %v3906_v25 }
  0xa2   : > { %1066 = vmatmul.mubr.bf16.gmra.mrb[8].mxu0 %v3908_v26 }
  0xa3   : > { %1075 = vmatprep.mubr.bf16.mxu0 %v3909_v27 }
  0xaa   : > { %1076 = vmatmul.mubr.bf16.gmra.mrb[12].mxu0 %v3911_v28 }
  0xab   : > { %3515 = vmatprep.mubr.msk.f32.mxu0 %vm1287_vm0, %v4071_v57 }
 0x165   : > { %v1047_v32 = vpop.f32.mrb[0].mxu0 }
 0x166   : > { %v1049_v33 = vpop.f32.mrb[1].mxu0 }
 0x167   : > { %v1051_v34 = vpop.f32.mrb[2].mxu0 }
 0x168   : > { %v4463_v35 = vpack.c.bf16 %v1051_v34, %v1047_v32  ;;  %v1053_v36 = vpop.f32.mrb[3].mxu0 }
 0x169   : > { %v4465_v37 = vpack.c.bf16 %v1053_v36, %v1049_v33 }
 0x16b   : > { %1254 = vmatprep.mubr.bf16.mxu1 %v4465_v37 }
 0x16c   : > { %1255 = vmatmul.mubr.bf16.vlgmr.msra.gmra.mrb[0].mxu1 %v4463_v35 }
 0x16d   : > { %v1057_v38 = vpop.f32.mrb[4].mxu0 }
 0x16e   : > { %v1059_v39 = vpop.f32.mrb[5].mxu0 }
 0x16f   : > { %v1061_v40 = vpop.f32.mrb[6].mxu0 }
 0x170   : > { %v4469_v41 = vpack.c.bf16 %v1061_v40, %v1057_v38  ;;  %v1063_v42 = vpop.f32.mrb[7].mxu0 }
 0x171   : > { %v4471_v43 = vpack.c.bf16 %v1063_v42, %v1059_v39 }
 0x173   : > { %1262 = vmatprep.mubr.bf16.mxu1 %v4471_v43 }
 0x174   : > { %1263 = vmatmul.mubr.bf16.gmra.mrb[4].mxu1 %v4469_v41 }
 0x175   : > { %v1067_v44 = vpop.f32.mrb[8].mxu0 }
 0x176   : > { %v1069_v45 = vpop.f32.mrb[9].mxu0 }
 0x177   : > { %v1071_v46 = vpop.f32.mrb[10].mxu0 }
 0x178   : > { %v4475_v47 = vpack.c.bf16 %v1071_v46, %v1067_v44  ;;  %v1073_v48 = vpop.f32.mrb[11].mxu0 }
 0x179   : > { %v4477_v49 = vpack.c.bf16 %v1073_v48, %v1069_v45  ;;  %v1486_v48 = vld [vmem:[%s4541_s17 + $0x10] sm:$0xff] }
 0x17b   : > { %1270 = vmatprep.mubr.bf16.mxu1 %v4477_v49 }
 0x17c   : > { %1271 = vmatmul.mubr.bf16.gmra.mrb[8].mxu1 %v4475_v47 }
 0x17d   : > { %v1077_v50 = vpop.f32.mrb[12].mxu0 }
 0x17e   : > { %v1079_v51 = vpop.f32.mrb[13].mxu0 }
 0x17f   : > { %v1081_v52 = vpop.f32.mrb[14].mxu0 }
 0x180   : > { %v4481_v53 = vpack.c.bf16 %v1081_v52, %v1077_v50  ;;  %v1083_v54 = vpop.f32.mrb[15].mxu0 }
 0x181   : > { %v4483_v55 = vpack.c.bf16 %v1083_v54, %v1079_v51 }
 0x183   : > { %1278 = vmatprep.mubr.bf16.mxu1 %v4483_v55 }
 0x184   : > { %1279 = vmatmul.mubr.bf16.gmra.mrb[12].mxu1 %v4481_v53 }
 0x185   : > { %3435 = vmatprep.mubr.msk.f32.mxu1 %vm1287_vm0, %v4071_v57 }
 0x23f   : > { %v3265_v58 = vpop.f32.mrb[0].mxu1 }
 0x240   : > { %v3266_v59 = vpop.f32.mrb[1].mxu1 }
 0x241   : > { %v3267_v60 = vadd.f32 %v3266_v59, %v3265_v58  ;;  %v3268_v61 = vpop.f32.mrb[2].mxu1  ;;  %v1487_v58 = vld [vmem:[%s4541_s17 + $0x18] sm:$0xff] }
 0x242   : > { %v3269_v62 = vpop.f32.mrb[3].mxu1 }
 0x243   : > { %v3270_v63 = vadd.f32 %v3269_v62, %v3268_v61  ;;  %1421 = vperm.xlu0 %3742, %v3267_v60  }
 0x245   : > { %v3583_v1 = vpack.c.bf16 %v3270_v63, %v3267_v60 }
 0x247   : > { %1425 = vperm.xlu0 %3742, %v3270_v63   ;;  %v3271_v2 = vpop.f32.mrb[4].mxu1  ;;  %3585 = vmatprep.subr.msk.bf16.mxu1 %vm4495_vm1, %v3583_v1 }
 0x248   : > { %v3272_v3 = vpop.f32.mrb[5].mxu1  ;;  %3588 = vmatpush3.bf16.xpose.msk.msra.mxu1 %vm4495_vm1, %v3583_v1  ;;  %v1488_v1 = vld [vmem:[%s4541_s17 + $0x20] sm:$0xff] }
 0x249   : > { %v3273_v4 = vadd.f32 %v3272_v3, %v3271_v2  ;;  %v3274_v5 = vpop.f32.mrb[6].mxu1 }
 0x24a   : > { %v3275_v6 = vpop.f32.mrb[7].mxu1 }
 0x24b   : > { %v3276_v7 = vadd.f32 %v3275_v6, %v3274_v5  ;;  %1429 = vperm.xlu1 %3743, %v3273_v4  }
 0x24d   : > { %v3589_v8 = vpack.c.bf16 %v3276_v7, %v3273_v4 }
 0x24f   : > { %1433 = vperm.xlu1 %3743, %v3276_v7   ;;  %v3277_v9 = vpop.f32.mrb[8].mxu1  ;;  %3591 = vmatprep.subr.msk.bf16.mxu1 %vm4495_vm1, %v3589_v8 }
 0x250   : > { %v3278_v10 = vpop.f32.mrb[9].mxu1  ;;  %3594 = vmatpush3.bf16.xpose.msk.msra.mxu1 %vm4495_vm1, %v3589_v8 }
 0x251   : > { %v3279_v11 = vadd.f32 %v3278_v10, %v3277_v9  ;;  %v3280_v12 = vpop.f32.mrb[10].mxu1  ;;  %v1489_v10 = vld [vmem:[%s4541_s17 + $0x28] sm:$0xff] }
 0x252   : > { %v3281_v13 = vpop.f32.mrb[11].mxu1 }
 0x253   : > { %v3282_v14 = vadd.f32 %v3281_v13, %v3280_v12  ;;  %1437 = vperm.xlu0 %3742, %v3279_v11  }
 0x255   : > { %v3595_v15 = vpack.c.bf16 %v3282_v14, %v3279_v11  ;;  %1441 = vperm.xlu1 %3743, %v3282_v14   ;;  %v1490_v14 = vld [vmem:[%s4541_s17 + $0x30] sm:$0xff] }
 0x257   : > { %v3283_v16 = vpop.f32.mrb[12].mxu1  ;;  %3597 = vmatprep.subr.msk.bf16.mxu1 %vm4495_vm1, %v3595_v15 }
 0x258   : > { %v3284_v17 = vpop.f32.mrb[13].mxu1  ;;  %3600 = vmatpush3.bf16.xpose.msk.msra.mxu1 %vm4495_vm1, %v3595_v15 }
 0x259   : > { %v3285_v18 = vadd.f32 %v3284_v17, %v3283_v16  ;;  %v3286_v19 = vpop.f32.mrb[14].mxu1 }
 0x25a   : > { %v3287_v20 = vpop.f32.mrb[15].mxu1 }
 0x25b   : > { %v3288_v21 = vadd.f32 %v3287_v20, %v3286_v19  ;;  %1445 = vperm.xlu0 %3742, %v3285_v18   ;;  %v1491_v20 = vld [vmem:[%s4541_s17 + $0x38] sm:$0xff] }
 0x25d   : > { %v3601_v22 = vpack.c.bf16 %v3288_v21, %v3285_v18  ;;  %1449 = vperm.xlu1 %3743, %v3288_v21  }
 0x25f   : > { %3603 = vmatprep.subr.msk.bf16.mxu1 %vm4495_vm1, %v3601_v22 }
 0x260   : > { %3606 = vmatpush3.bf16.xpose.msk.msra.mxu1 %vm4495_vm1, %v3601_v22 }
 0x261   : > { %1617 = vmatprep.subr.bf16.mxu1 %v4465_v37 }
 0x267   : > { %3436 = vmatmul.mubr.msk.f32.vlgmr.msra.gmra.mrb[16].mxu1 %vm1287_vm0, %v4071_v57 }
 0x268   : > { %1618 = vmatpush1.bf16.msra.mxu1 %v4463_v35  ;;  %3438 = vmatprep.mubr.msk.f32.mxu1 %vm1287_vm0, %v4071_v57  ;;  %v1484_v35 = vld [vmem:[%s4541_s17] sm:$0xff]  ;;  %s4074_s17 = smov 127  }
 0x269   : > { %1619 = vmatprep.subr.bf16.mxu1 %v4471_v43 }
 0x26b   : > { %3439 = vmatmul.mubr.msk.f32.gmra.mrb[18].mxu1 %vm1287_vm0, %v4071_v57 }
 0x26c   : > { %1620 = vmatpush1.bf16.msra.mxu1 %v4469_v41  ;;  %3441 = vmatprep.mubr.msk.f32.mxu1 %vm1287_vm0, %v4071_v57 }
 0x26d   : > { %1621 = vmatprep.subr.bf16.mxu1 %v4477_v49 }
 0x26f   : > { %3442 = vmatmul.mubr.msk.f32.gmra.mrb[20].mxu1 %vm1287_vm0, %v4071_v57 }
 0x270   : > { %1622 = vmatpush1.bf16.msra.mxu1 %v4475_v47  ;;  %3444 = vmatprep.mubr.msk.f32.mxu1 %vm1287_vm0, %v4071_v57 }
 0x271   : > { %1623 = vmatprep.subr.bf16.mxu1 %v4483_v55 }
 0x273   : > { %3445 = vmatmul.mubr.msk.f32.gmra.mrb[22].mxu1 %vm1287_vm0, %v4071_v57 }
 0x274   : > { %1624 = vmatpush1.bf16.msra.mxu1 %v4481_v53 }
 0x2c2   : > { %v1422_v23 = vpop.permute.xlu0 %1421 }
 0x2c6   : > { %v1426_v25 = vpop.permute.xlu0 %1425 }
 0x2ca   : > { %v1430_v24 = vpop.permute.xlu1 %1429 }
 0x2ce   : > { %v1434_v32 = vpop.permute.xlu1 %1433 }
 0x2d2   : > { %v1438_v49 = vpop.permute.xlu0 %1437 }
 0x2d4   : > { %v1442_v44 = vpop.permute.xlu1 %1441 }
 0x2da   : > { %v1446_v2 = vpop.permute.xlu0 %1445 }
 0x2dc   : > { %v1450_v61 = vpop.permute.xlu1 %1449 }
 0x33a   : > { %v3437_v26 = vpop.f32.mrb[16].mxu1 }
 0x33b   : > { %v1453_v27 = vadd.f32 %v3437_v26, %v1426_v25  ;;  %v1381_v28 = vpop.f32.mrb[17].mxu1 }
 0x33c   : > { %v1452_v29 = vadd.f32 %v1422_v23, %v1381_v28 }
 0x33d   : > { %vm1461_vm2 = vcmp.gt.f32.partialorder %v1453_v27, 0.0  ;;  %v1469_v30 = vmul.f32 0.2, %v1453_v27 }
 0x33e   : > { %vm1460_vm3 = vcmp.gt.f32.partialorder %v1452_v29, 0.0  ;;  %v1468_v33 = vmul.f32 0.2, %v1452_v29  ;;  %v3440_v34 = vpop.f32.mrb[18].mxu1 }
 0x33f   : > { %v1455_v36 = vadd.f32 %v3440_v34, %v1434_v32  ;;  %v1391_v37 = vpop.f32.mrb[19].mxu1  ;;  %v1477_v38 = vsel %vm1461_vm2, %v1453_v27, %v1469_v30 }
 0x340   : > { %v1454_v39 = vadd.f32 %v1430_v24, %v1391_v37  ;;  %v4545_v40 = vadd.f32 %v1485_v31, %v1477_v38  ;;  %v1476_v41 = vsel %vm1460_vm3, %v1452_v29, %v1468_v33 }
 0x341   : > { %vm1463_vm5 = vcmp.gt.f32.partialorder %v1455_v36, 0.0  ;;  %v1471_v42 = vmul.f32 0.2, %v1455_v36  ;;  %v1492_v43 = vadd.f32 %v1484_v35, %v1476_v41 }
 0x342   : > { %vm1462_vm6 = vcmp.gt.f32.partialorder %v1454_v39, 0.0  ;;  %v1470_v45 = vmul.f32 0.2, %v1454_v39  ;;  %v3443_v46 = vpop.f32.mrb[20].mxu1  ;;  %v1504_v47 = vsel %vm1500_vm4, %v4545_v40, -inf }
 0x343   : > { %v1457_v50 = vadd.f32 %v3443_v46, %v1442_v44  ;;  %1505 = vmax.xlane.f32.xlu1 %v1504_v47  ;;  %v1401_v51 = vpop.f32.mrb[21].mxu1  ;;  %v1501_v52 = vsel %vm1500_vm4, %v1492_v43, -inf  ;;  %v1479_v55 = vsel %vm1463_vm5, %v1455_v36, %v1471_v42 }
 0x344   : > { %v1456_v53 = vadd.f32 %v1438_v49, %v1401_v51  ;;  %1502 = vmax.xlane.f32.xlu0 %v1501_v52  ;;  %v1478_v54 = vsel %vm1462_vm6, %v1454_v39, %v1470_v45  ;;  %v1495_v6 = vadd.f32 %v1487_v58, %v1479_v55 }
 0x345   : > { %vm1465_vm7 = vcmp.gt.f32.partialorder %v1457_v50, 0.0  ;;  %v1473_v59 = vmul.f32 0.2, %v1457_v50  ;;  %v1494_v60 = vadd.f32 %v1486_v48, %v1478_v54 }
 0x346   : > { %vm1464_vm8 = vcmp.gt.f32.partialorder %v1456_v53, 0.0  ;;  %v1472_v62 = vmul.f32 0.2, %v1456_v53  ;;  %v3446_v63 = vpop.f32.mrb[22].mxu1  ;;  %v1510_v15 = vsel %vm1500_vm4, %v1495_v6, -inf }
 0x347   : > { %v1459_v3 = vadd.f32 %v3446_v63, %v1450_v61  ;;  %v1411_v4 = vpop.f32.mrb[23].mxu1  ;;  %v1507_v5 = vsel %vm1500_vm4, %v1494_v60, -inf  ;;  %v1481_v9 = vsel %vm1465_vm7, %v1457_v50, %v1473_v59 }
 0x348   : > { %v1458_v7 = vadd.f32 %v1446_v2, %v1411_v4  ;;  %1508 = vmax.xlane.f32.xlu0 %v1507_v5  ;;  %v1480_v8 = vsel %vm1464_vm8, %v1456_v53, %v1472_v62  ;;  %v1497_v17 = vadd.f32 %v1489_v10, %v1481_v9  ;;  %v4072_v5 = vmov 0  }
 0x349   : > { %vm1467_vm9 = vcmp.gt.f32.partialorder %v1459_v3, 0.0  ;;  %v1475_v11 = vmul.f32 0.2, %v1459_v3  ;;  %v1496_v12 = vadd.f32 %v1488_v1, %v1480_v8  ;;  %1649 = vmatprep.mubr.bf16.mxu1 %v4072_v5  ;;  %3784 = vset.pattern.permute.xlu1 %v4072_v5 }
 0x34a   : > { %vm1466_vm10 = vcmp.gt.f32.partialorder %v1458_v7, 0.0  ;;  %v1474_v13 = vmul.f32 0.2, %v1458_v7  ;;  %v1516_v22 = vsel %vm1500_vm4, %v1497_v17, -inf }
 0x34b   : > { %v1513_v16 = vsel %vm1500_vm4, %v1496_v12, -inf  ;;  %v1483_v19 = vsel %vm1467_vm9, %v1459_v3, %v1475_v11 }
 0x34c   : > { %1511 = vmax.xlane.f32.xlu0 %v1510_v15  ;;  %1514 = vmax.xlane.f32.xlu1 %v1513_v16  ;;  %v1482_v18 = vsel %vm1466_vm10, %v1458_v7, %v1474_v13  ;;  %v1499_v24 = vadd.f32 %v1491_v20, %v1483_v19  ;;  %v3930_v19 = vld [vmem:[%s4962_s5 + $0x48] sm:$0xff]  }
 0x34d   : > { %v1498_v21 = vadd.f32 %v1490_v14, %v1482_v18 }
 0x34e   : > { %v1522_v25 = vsel %vm1500_vm4, %v1499_v24, -inf }
 0x34f   : > { %v1519_v23 = vsel %vm1500_vm4, %v1498_v21, -inf }
 0x350   : > { %1517 = vmax.xlane.f32.xlu0 %v1516_v22  ;;  %1520 = vmax.xlane.f32.xlu1 %v1519_v23  ;;  %v3932_v23 = vld [vmem:[%s4962_s5 + $0x50] sm:$0xff]  }
 0x354   : > { %1523 = vmax.xlane.f32.xlu0 %v1522_v25 }
 0x3d0   : > { %v1506_v26 = vpop.xlane.xlu1 %1505 }
 0x3d1   : > { %v1526_v27 = vsub.f32 %v4545_v40, %v1506_v26  ;;  %v1503_v28 = vpop.xlane.xlu0 %1502 }
 0x3d2   : > { %v1525_v29 = vsub.f32 %v1492_v43, %v1503_v28  ;;  %v3933_v28 = vld [vmem:[%s4962_s5 + $0x10] sm:$0xff]  }
 0x3d3   : > { %v1535_v30 = vmul.f32 1.442695, %v1526_v27 }
 0x3d4   : > { %v1533_v31 = vmul.f32 1.442695, %v1525_v29 }
 0x3d5   : > { %3958 = vpow2.f32 %v1535_v30  ;;  %v1509_v32 = vpop.xlane.xlu0 %1508  ;;  %v3934_v30 = vld [vmem:[%s4962_s5 + $0x58] sm:$0xff]  }
 0x3d6   : > { %3960 = vpow2.f32 %v1533_v31  ;;  %v1527_v33 = vsub.f32 %v1494_v60, %v1509_v32 }
 0x3d8   : > { %v1537_v34 = vmul.f32 1.442695, %v1527_v33  ;;  %v3935_v33 = vld [vmem:[%s4962_s5 + $0x18] sm:$0xff]  }
 0x3d9   : > { %v1512_v35 = vpop.xlane.xlu0 %1511  ;;  %v1515_v36 = vpop.xlane.xlu1 %1514 }
 0x3da   : > { %3962 = vpow2.f32 %v1537_v34  ;;  %v1528_v37 = vsub.f32 %v1495_v6, %v1512_v35  ;;  %v1529_v38 = vsub.f32 %v1496_v12, %v1515_v36  ;;  %v3928_v6 = vld [vmem:[%s4962_s5 + $0x40] sm:$0xff]  }
 0x3db   : > { %3305 = vmatprep.subr.bf16.mxu1 %v3928_v6  ;;  %v3936_v35 = vld [vmem:[%s4962_s5 + $0x60] sm:$0xff]  }
 0x3dc   : > { %v1539_v39 = vmul.f32 1.442695, %v1528_v37  ;;  %v1541_v41 = vmul.f32 1.442695, %v1529_v38  ;;  %v3937_v37 = vld [vmem:[%s4962_s5 + $0x20] sm:$0xff]  }
 0x3dd   : > { %v1518_v42 = vpop.xlane.xlu0 %1517  ;;  %v1521_v44 = vpop.xlane.xlu1 %1520 }
 0x3de   : > { %3964 = vpow2.f32 %v1539_v39  ;;  %v1530_v40 = vsub.f32 %v1497_v17, %v1518_v42  ;;  %v1531_v45 = vsub.f32 %v1498_v21, %v1521_v44  ;;  %v3929_v17 = vld [vmem:[%s4962_s5] sm:$0xff]   ;;  %v3931_v21 = vld [vmem:[%s4962_s5 + $0x8] sm:$0xff]  }
 0x3df   : > { %v3959_v43 = vpop.eup %3958  ;;  %3966 = vpow2.f32 %v1541_v41  ;;  %v3938_v39 = vld [vmem:[%s4962_s5 + $0x68] sm:$0xff]  }
 0x3e0   : > { %v3961_v46 = vpop.eup %3960  ;;  %v1543_v47 = vmul.f32 1.442695, %v1530_v40  ;;  %v1545_v48 = vmul.f32 1.442695, %v1531_v45  ;;  %v1552_v49 = vsel %vm1500_vm4, %v3959_v43, 0.0 }
 0x3e1   : > { %1553 = vadd.xlane.f32.xlu0 %v1552_v49  ;;  %v1524_v50 = vpop.xlane.xlu0 %1523  ;;  %v1549_v51 = vsel %vm1500_vm4, %v3961_v46, 0.0  ;;  %v3943_v49 = vld [vmem:[%s4962_s5 + $0x38] sm:$0xff]  }
 0x3e2   : > { %3968 = vpow2.f32 %v1543_v47  ;;  %v1532_v52 = vsub.f32 %v1499_v24, %v1524_v50  ;;  %1550 = vadd.xlane.f32.xlu1 %v1549_v51  ;;  %v3941_v47 = vld [vmem:[%s4962_s5 + $0x30] sm:$0xff]   ;;  %v3944_v50 = vld [vmem:[%s4964_s7] sm:$0xff]   ;;  %v1595_v51 = vlaneseq }
 0x3e3   : > { %3970 = vpow2.f32 %v1545_v48  ;;  %v3942_v48 = vld [vmem:[%s4962_s5 + $0x78] sm:$0xff]  }
 0x3e4   : > { %v3963_v53 = vpop.eup %3962  ;;  %v1547_v54 = vmul.f32 1.442695, %v1532_v52  ;;  %v1596_v52 = vshrl.u32 %v1595_v51, 7 }
 0x3e5   : > { %v1555_v55 = vsel %vm1500_vm4, %v3963_v53, 0.0 }
 0x3e6   : > { %3972 = vpow2.f32 %v1547_v54  ;;  %1556 = vadd.xlane.f32.xlu1 %v1555_v55  ;;  %v1593_v54 = vld [vmem:[%s4961_s4] sm:$0x3]  ;;  %v1601_v55 = vsub.s32 1, %v1596_v52 }
 0x3e8   : > { %v3965_v58 = vpop.eup %3964 }
 0x3e9   : > { %v4568_v59 = vpop.eup %3966  ;;  %v1558_v60 = vsel %vm1500_vm4, %v3965_v58, 0.0 }
 0x3ea   : > { %1559 = vadd.xlane.f32.xlu0 %v1558_v60  ;;  %v1561_v61 = vsel %vm1500_vm4, %v4568_v59, 0.0 }
 0x3eb   : > { %1562 = vadd.xlane.f32.xlu1 %v1561_v61 }
 0x3ec   : > { %v3969_v62 = vpop.eup %3968 }
 0x3ed   : > { %v4573_v63 = vpop.eup %3970  ;;  %v1564_v1 = vsel %vm1500_vm4, %v3969_v62, 0.0 }
 0x3ee   : > { %1565 = vadd.xlane.f32.xlu0 %v1564_v1  ;;  %v1567_v2 = vsel %vm1500_vm4, %v4573_v63, 0.0 }
 0x3ef   : > { %1568 = vadd.xlane.f32.xlu1 %v1567_v2 }
 0x3f0   : > { %v4578_v3 = vpop.eup %3972 }
 0x3f1   : > { %v1570_v4 = vsel %vm1500_vm4, %v4578_v3, 0.0 }
 0x3f2   : > { %1571 = vadd.xlane.f32.xlu0 %v1570_v4 }
 0x46e   : > { %v1554_v7 = vpop.xlane.xlu0 %1553 }
 0x46f   : > { %3974 = vrcp.f32 %v1554_v7  ;;  %v1551_v8 = vpop.xlane.xlu1 %1550 }
 0x470   : > { %3976 = vrcp.f32 %v1551_v8 }
 0x473   : > { %v1557_v9 = vpop.xlane.xlu1 %1556 }
 0x474   : > { %3978 = vrcp.f32 %v1557_v9 }
 0x477   : > { %v1560_v10 = vpop.xlane.xlu0 %1559 }
 0x478   : > { %3980 = vrcp.f32 %v1560_v10  ;;  %v1563_v15 = vpop.xlane.xlu1 %1562 }
 0x479   : > { %v3975_v11 = vpop.eup %3974 }
 0x47a   : > { %v3977_v12 = vpop.eup %3976  ;;  %v1582_v13 = vmul.f32 %v3975_v11, %v3959_v43  ;;  %v3939_v43 = vld [vmem:[%s4962_s5 + $0x28] sm:$0xff]  }
 0x47b   : > { %v1581_v14 = vmul.f32 %v3977_v12, %v3961_v46  ;;  %v1566_v16 = vpop.xlane.xlu0 %1565  ;;  %v3940_v46 = vld [vmem:[%s4962_s5 + $0x70] sm:$0xff]  }
 0x47c   : > { %3982 = vrcp.f32 %v1566_v16  ;;  %v1569_v25 = vpop.xlane.xlu1 %1568 }
 0x47d   : > { %v1589_v18 = vpack.c.bf16 %v1582_v13, %v1581_v14  ;;  %3984 = vrcp.f32 %v1563_v15  ;;  %v3945_v15 = vld [vmem:[%s4964_s7 + $0x8] sm:$0xff]  }
 0x47e   : > { %v3979_v20 = vpop.eup %3978 }
 0x47f   : > { %3147 = vmatmul.mubr.msk.bf16.vlgmr.msra.gmra.mrb[24].mxu1 %vm1500_vm4, %v1589_v18  ;;  %v1572_v22 = vpop.xlane.xlu0 %1571  ;;  %v1583_v26 = vmul.f32 %v3979_v20, %v3963_v53  ;;  %v1597_v53 = vsub.s32 0, %v1596_v52 }
 0x480   : > { %1659 = vmatprep.mubr.bf16.mxu1 %v4072_v5  ;;  %3306 = vmatpush3.bf16.msra.mxu1 %v3929_v17  ;;  %3986 = vrcp.f32 %v1572_v22 }
 0x481   : > { %3307 = vmatprep.subr.bf16.mxu1 %v3930_v19  ;;  %3988 = vrcp.f32 %v1569_v25 }
 0x482   : > { %v3981_v24 = vpop.eup %3980 }
 0x483   : > { %v1584_v27 = vmul.f32 %v3981_v24, %v3965_v58  ;;  %v1598_v58 = vrot.slane %v1593_v54, %v1597_v53 }
 0x484   : > { %3308 = vmatpush3.bf16.msra.mxu1 %v3931_v21 }
 0x485   : > { %v1590_v29 = vpack.c.bf16 %v1584_v27, %v1583_v26  ;;  %3309 = vmatprep.subr.bf16.mxu1 %v3932_v23  ;;  %v3946_v23 = vld [vmem:[%s4964_s7 + $0x10] sm:$0xff]  }
 0x486   : > { %v3983_v31 = vpop.eup %3982 }
 0x487   : > { %3148 = vmatmul.mubr.msk.bf16.gmra.mrb[28].mxu1 %vm1500_vm4, %v1590_v29  ;;  %v3985_v32 = vpop.eup %3984  ;;  %v1586_v34 = vmul.f32 %v3983_v31, %v3969_v62 }
 0x488   : > { %1669 = vmatprep.mubr.bf16.mxu1 %v4072_v5  ;;  %3310 = vmatpush3.bf16.msra.mxu1 %v3933_v28  ;;  %v1585_v36 = vmul.f32 %v3985_v32, %v4568_v59  ;;  %v4648_v59 = vrot.slane %v1593_v54, %v1601_v55 }
 0x489   : > { %3311 = vmatprep.subr.bf16.mxu1 %v3934_v30 }
 0x48a   : > { %v1591_v38 = vpack.c.bf16 %v1586_v34, %v1585_v36  ;;  %v3987_v41 = vpop.eup %3986 }
 0x48b   : > { %v3989_v42 = vpop.eup %3988  ;;  %v1588_v44 = vmul.f32 %v3987_v41, %v4578_v3 }
 0x48c   : > { %3312 = vmatpush3.bf16.msra.mxu1 %v3935_v33  ;;  %v1587_v40 = vmul.f32 %v3989_v42, %v4573_v63 }
 0x48d   : > { %3313 = vmatprep.subr.bf16.mxu1 %v3936_v35 }
 0x48e   : > { %v1592_v45 = vpack.c.bf16 %v1588_v44, %v1587_v40 }
 0x48f   : > { %3149 = vmatmul.mubr.msk.bf16.gmra.mrb[32].mxu1 %vm1500_vm4, %v1591_v38 }
 0x490   : > { %1679 = vmatprep.mubr.bf16.mxu1 %v4072_v5  ;;  %3314 = vmatpush3.bf16.msra.mxu1 %v3937_v37 }
 0x491   : > { %3315 = vmatprep.subr.bf16.mxu1 %v3938_v39 }
 0x494   : > { %3316 = vmatpush3.bf16.msra.mxu1 %v3939_v43 }
 0x495   : > { %3317 = vmatprep.subr.bf16.mxu1 %v3940_v46 }
 0x497   : > { %3150 = vmatmul.mubr.msk.bf16.gmra.mrb[36].mxu1 %vm1500_vm4, %v1592_v45 }
 0x498   : > { %3318 = vmatpush3.bf16.msra.mxu1 %v3941_v47 }
 0x499   : > { %3319 = vmatprep.subr.bf16.mxu1 %v3942_v48 }
 0x49c   : > { %3320 = vmatpush3.bf16.msra.mxu1 %v3943_v49 }
 0x49d   : > { %3447 = vmatprep.subr.bf16.mxu1 %v3944_v50 }
 0x552   : > { %v1651_v60 = vpop.f32.mrb[24].mxu1 }
 0x553   : > { %v1652_v61 = vadd.f32 %v1651_v60, %v1598_v58  ;;  %v1653_v62 = vpop.f32.mrb[25].mxu1  ;;  %v3947_v60 = vld [vmem:[%s4964_s7 + $0x18] sm:$0xff]  }
 0x554   : > { %v1654_v63 = vadd.f32 %v1653_v62, %v4648_v59  ;;  %v1655_v1 = vpop.f32.mrb[26].mxu1  ;;  %v3951_v62 = vld [vmem:[%s4964_s7 + $0x38] sm:$0xff]  }
 0x555   : > { %v1656_v2 = vadd.f32 %v1655_v1, %v1598_v58  ;;  %v1657_v3 = vpop.f32.mrb[27].mxu1  ;;  %v1690_v6 = vmax.f32 %v1652_v61, 0.0  ;;  %v3950_v61 = vld [vmem:[%s4964_s7 + $0x30] sm:$0xff]  }
 0x556   : > { %v1658_v4 = vadd.f32 %v1657_v3, %v4648_v59  ;;  %v1691_v8 = vmax.f32 %v1654_v63, 0.0  ;;  %v3952_v63 = vld [vmem:[%s4966_s9] sm:$0xff]  }
 0x557   : > { %v1692_v7 = vmax.f32 %v1656_v2, 0.0  ;;  %v3151_v2 = vld [vmem:[%s4963_s6] ss:$0 sm:$0xff] }
 0x558   : > { %v1693_v9 = vmax.f32 %v1658_v4, 0.0 }
 0x559   : > { %v1706_v10 = vpack.c.bf16 %v1692_v7, %v1690_v6 }
 0x55a   : > { %v1707_v11 = vpack.c.bf16 %v1693_v9, %v1691_v8  ;;  %v1661_v12 = vpop.f32.mrb[28].mxu1 }
 0x55b   : > { %v1662_v13 = vadd.f32 %v1661_v12, %v1598_v58  ;;  %v1663_v14 = vpop.f32.mrb[29].mxu1 }
 0x55c   : > { %v1664_v16 = vadd.f32 %v1663_v14, %v4648_v59  ;;  %v1665_v17 = vpop.f32.mrb[30].mxu1  ;;  %1881 = vmatprep.mubr.bf16.mxu1 %v1707_v11 }
 0x55d   : > { %v1666_v18 = vadd.f32 %v1665_v17, %v1598_v58  ;;  %v1667_v19 = vpop.f32.mrb[31].mxu1  ;;  %1882 = vmatmul.mubr.bf16.vlgmr.msra.gmra.mrb[40].mxu1 %v1706_v10  ;;  %v1694_v21 = vmax.f32 %v1662_v13, 0.0 }
 0x55e   : > { %v1668_v20 = vadd.f32 %v1667_v19, %v4648_v59  ;;  %3448 = vmatpush3.bf16.msra.mxu1 %v3944_v50  ;;  %v1695_v24 = vmax.f32 %v1664_v16, 0.0 }
 0x55f   : > { %v1696_v22 = vmax.f32 %v1666_v18, 0.0  ;;  %3449 = vmatprep.subr.bf16.mxu1 %v3945_v15 }
 0x560   : > { %v1697_v25 = vmax.f32 %v1668_v20, 0.0 }
 0x561   : > { %v1708_v26 = vpack.c.bf16 %v1696_v22, %v1694_v21 }
 0x562   : > { %v1709_v27 = vpack.c.bf16 %v1697_v25, %v1695_v24  ;;  %v1671_v28 = vpop.f32.mrb[32].mxu1  ;;  %3450 = vmatpush3.bf16.msra.mxu1 %v3945_v15 }
 0x563   : > { %v1672_v29 = vadd.f32 %v1671_v28, %v1598_v58  ;;  %v1673_v30 = vpop.f32.mrb[33].mxu1  ;;  %3451 = vmatprep.subr.bf16.mxu1 %v3946_v23 }
 0x564   : > { %v1674_v31 = vadd.f32 %v1673_v30, %v4648_v59  ;;  %v1675_v32 = vpop.f32.mrb[34].mxu1  ;;  %1889 = vmatprep.mubr.bf16.mxu1 %v1709_v27 }
 0x565   : > { %v1676_v33 = vadd.f32 %v1675_v32, %v1598_v58  ;;  %v1677_v34 = vpop.f32.mrb[35].mxu1  ;;  %1890 = vmatmul.mubr.bf16.gmra.mrb[44].mxu1 %v1708_v26  ;;  %v1698_v36 = vmax.f32 %v1672_v29, 0.0  ;;  %v3953_v29 = vld [vmem:[%s4966_s9 + $0x8] sm:$0xff]  }
 0x566   : > { %v1678_v35 = vadd.f32 %v1677_v34, %v4648_v59  ;;  %3452 = vmatpush3.bf16.msra.mxu1 %v3946_v23  ;;  %v1699_v38 = vmax.f32 %v1674_v31, 0.0 }
 0x567   : > { %v1700_v37 = vmax.f32 %v1676_v33, 0.0  ;;  %3453 = vmatprep.subr.bf16.mxu1 %v3947_v60 }
 0x568   : > { %v1701_v39 = vmax.f32 %v1678_v35, 0.0 }
 0x569   : > { %v1710_v41 = vpack.c.bf16 %v1700_v37, %v1698_v36 }
 0x56a   : > { %v1711_v42 = vpack.c.bf16 %v1701_v39, %v1699_v38  ;;  %v1681_v44 = vpop.f32.mrb[36].mxu1  ;;  %3454 = vmatpush3.bf16.msra.mxu1 %v3947_v60 }
 0x56b   : > { %v1682_v40 = vadd.f32 %v1681_v44, %v1598_v58  ;;  %v1683_v45 = vpop.f32.mrb[37].mxu1 }
 0x56c   : > { %v1684_v43 = vadd.f32 %v1683_v45, %v4648_v59  ;;  %v1685_v46 = vpop.f32.mrb[38].mxu1  ;;  %1897 = vmatprep.mubr.bf16.mxu1 %v1711_v42 }
 0x56d   : > { %v1686_v47 = vadd.f32 %v1685_v46, %v1598_v58  ;;  %v1687_v48 = vpop.f32.mrb[39].mxu1  ;;  %1898 = vmatmul.mubr.bf16.gmra.mrb[48].mxu1 %v1710_v41  ;;  %v1702_v50 = vmax.f32 %v1682_v40, 0.0  ;;  %v3948_v58 = vld [vmem:[%s4964_s7 + $0x20] sm:$0xff]  }
 0x56e   : > { %v1688_v49 = vadd.f32 %v1687_v48, %v4648_v59  ;;  %v1703_v52 = vmax.f32 %v1684_v43, 0.0  ;;  %3455 = vmatprep.subr.bf16.mxu1 %v3948_v58  ;;  %v3949_v59 = vld [vmem:[%s4964_s7 + $0x28] sm:$0xff]   ;;  %v3954_v48 = vld [vmem:[%s4966_s9 + $0x10] sm:$0xff]  }
 0x56f   : > { %v1704_v51 = vmax.f32 %v1686_v47, 0.0  ;;  %3456 = vmatpush3.bf16.msra.mxu1 %v3948_v58 }
 0x570   : > { %v1705_v53 = vmax.f32 %v1688_v49, 0.0  ;;  %3457 = vmatprep.subr.bf16.mxu1 %v3949_v59  ;;  %v3955_v49 = vld [vmem:[%s4966_s9 + $0x18] sm:$0xff]  }
 0x571   : > { %v1712_v54 = vpack.c.bf16 %v1704_v51, %v1702_v50  ;;  %v3956_v50 = vld [vmem:[%s4968_s11] sm:$0xff]  }
 0x572   : > { %v1713_v55 = vpack.c.bf16 %v1705_v53, %v1703_v52  ;;  %v3168_v51 = vld [vmem:[%s4965_s8] ss:$0 sm:$0xff] }
 0x573   : > { %3458 = vmatpush3.bf16.msra.mxu1 %v3949_v59 }
 0x574   : > { %1905 = vmatprep.mubr.bf16.mxu1 %v1713_v55  ;;  %3459 = vmatprep.subr.bf16.mxu1 %v3950_v61 }
 0x575   : > { %1906 = vmatmul.mubr.bf16.gmra.mrb[52].mxu1 %v1712_v54 }
 0x577   : > { %3460 = vmatpush3.bf16.msra.mxu1 %v3950_v61 }
 0x578   : > { %3461 = vmatprep.subr.bf16.mxu1 %v3951_v62 }
 0x57b   : > { %3462 = vmatpush3.bf16.msra.mxu1 %v3951_v62 }
 0x57c   : > { %3471 = vmatprep.subr.bf16.mxu1 %v3952_v63 }
 0x630   : > { %v3321_v1 = vpop.f32.mrb[40].mxu1 }
 0x631   : > { %v3322_v3 = vpop.f32.mrb[41].mxu1 }
 0x632   : > { %v3323_v4 = vadd.f32 %v3322_v3, %v3321_v1  ;;  %v3324_v6 = vpop.f32.mrb[42].mxu1 }
 0x633   : > { %v3325_v7 = vpop.f32.mrb[43].mxu1 }
 0x634   : > { %v1884_v8 = vadd.f32 %v3323_v4, %v3151_v2  ;;  %v3326_v9 = vadd.f32 %v3325_v7, %v3324_v6 }
 0x636   : > { %v1887_v10 = vadd.f32 %v3326_v9, %v3151_v2  ;;  %v1914_v11 = vmax.f32 %v1884_v8, 0.0 }
 0x638   : > { %v1915_v12 = vmax.f32 %v1887_v10, 0.0  ;;  %v3327_v13 = vpop.f32.mrb[44].mxu1 }
 0x639   : > { %v3328_v14 = vpop.f32.mrb[45].mxu1 }
 0x63a   : > { %v3329_v15 = vadd.f32 %v3328_v14, %v3327_v13  ;;  %v3330_v16 = vpop.f32.mrb[46].mxu1  ;;  %v1922_v17 = vpack.c.bf16 %v1915_v12, %v1914_v11 }
 0x63b   : > { %v3331_v18 = vpop.f32.mrb[47].mxu1 }
 0x63c   : > { %v1892_v19 = vadd.f32 %v3329_v15, %v3151_v2  ;;  %v3332_v20 = vadd.f32 %v3331_v18, %v3330_v16  ;;  %3463 = vmatprep.mubr.bf16.mxu1 %v1922_v17 }
 0x63e   : > { %v1895_v21 = vadd.f32 %v3332_v20, %v3151_v2  ;;  %v1916_v22 = vmax.f32 %v1892_v19, 0.0  ;;  %v3957_v20 = vld [vmem:[%s4968_s11 + $0x8] sm:$0xff]  }
 0x640   : > { %v1917_v23 = vmax.f32 %v1895_v21, 0.0  ;;  %v3333_v24 = vpop.f32.mrb[48].mxu1  ;;  %v3177_v21 = vld [vmem:[%s4967_s10] ss:$0 sm:$0xff] }
 0x641   : > { %v3334_v25 = vpop.f32.mrb[49].mxu1 }
 0x642   : > { %v1923_v26 = vpack.c.bf16 %v1917_v23, %v1916_v22  ;;  %v3335_v27 = vadd.f32 %v3334_v25, %v3333_v24  ;;  %v3336_v28 = vpop.f32.mrb[50].mxu1 }
 0x643   : > { %v3337_v30 = vpop.f32.mrb[51].mxu1 }
 0x644   : > { %v1900_v31 = vadd.f32 %v3335_v27, %v3151_v2  ;;  %v3338_v32 = vadd.f32 %v3337_v30, %v3336_v28  ;;  %3464 = vmatmul.mubr.bf16.vlgmr.msra.gmra.mrb[56].mxu1 %v1923_v26 }
 0x645   : > { %3472 = vmatpush3.bf16.msra.mxu1 %v3952_v63 }
 0x646   : > { %v1903_v33 = vadd.f32 %v3338_v32, %v3151_v2  ;;  %3473 = vmatprep.subr.bf16.mxu1 %v3953_v29  ;;  %v1918_v34 = vmax.f32 %v1900_v31, 0.0 }
 0x648   : > { %v1919_v35 = vmax.f32 %v1903_v33, 0.0  ;;  %v3339_v36 = vpop.f32.mrb[52].mxu1 }
 0x649   : > { %v3340_v37 = vpop.f32.mrb[53].mxu1  ;;  %3474 = vmatpush3.bf16.msra.mxu1 %v3953_v29 }
 0x64a   : > { %v3341_v38 = vadd.f32 %v3340_v37, %v3339_v36  ;;  %v3342_v39 = vpop.f32.mrb[54].mxu1  ;;  %v1924_v41 = vpack.c.bf16 %v1919_v35, %v1918_v34  ;;  %3475 = vmatprep.subr.bf16.mxu1 %v3954_v48 }
 0x64b   : > { %v3343_v42 = vpop.f32.mrb[55].mxu1 }
 0x64c   : > { %v1908_v44 = vadd.f32 %v3341_v38, %v3151_v2  ;;  %v3344_v40 = vadd.f32 %v3343_v42, %v3342_v39  ;;  %3467 = vmatprep.mubr.bf16.mxu1 %v1924_v41 }
 0x64d   : > { %3476 = vmatpush3.bf16.msra.mxu1 %v3954_v48 }
 0x64e   : > { %v1911_v45 = vadd.f32 %v3344_v40, %v3151_v2  ;;  %v1920_v43 = vmax.f32 %v1908_v44, 0.0  ;;  %3477 = vmatprep.subr.bf16.mxu1 %v3955_v49 }
 0x650   : > { %v1921_v46 = vmax.f32 %v1911_v45, 0.0 }
 0x651   : > { %3478 = vmatpush3.bf16.msra.mxu1 %v3955_v49 }
 0x652   : > { %v1925_v47 = vpack.c.bf16 %v1921_v46, %v1920_v43  ;;  %3487 = vmatprep.subr.bf16.mxu1 %v3956_v50 }
 0x654   : > { %3468 = vmatmul.mubr.bf16.gmra.mrb[60].mxu1 %v1925_v47 }
 0x717   : > { %v3465_v52 = vpop.f32.mrb[56].mxu1 }
 0x718   : > { %v2040_v53 = vadd.f32 %v3465_v52, %v3168_v51  ;;  %v2031_v54 = vpop.f32.mrb[57].mxu1 }
 0x719   : > { %v2032_v55 = vadd.f32 %v3168_v51, %v2031_v54  ;;  %v3466_v60 = vpop.f32.mrb[58].mxu1 }
 0x71a   : > { %v2043_v58 = vadd.f32 %v3466_v60, %v3168_v51  ;;  %v2034_v59 = vpop.f32.mrb[59].mxu1  ;;  %v2064_v62 = vmax.f32 %v2040_v53, 0.0 }
 0x71b   : > { %v2035_v61 = vadd.f32 %v3168_v51, %v2034_v59  ;;  %v2062_v1 = vmax.f32 %v2032_v55, 0.0 }
 0x71c   : > { %v2065_v63 = vmax.f32 %v2043_v58, 0.0 }
 0x71d   : > { %v2063_v2 = vmax.f32 %v2035_v61, 0.0 }
 0x71e   : > { %v2071_v3 = vpack.c.bf16 %v2065_v63, %v2064_v62 }
 0x71f   : > { %v2070_v4 = vpack.c.bf16 %v2063_v2, %v2062_v1 }
 0x721   : > { %3479 = vmatprep.mubr.msk.bf16.mxu1 %vm1500_vm4, %v2070_v4 }
 0x722   : > { %3480 = vmatmul.mubr.msk.bf16.vlgmr.msra.gmra.mrb[64].mxu1 %vm1500_vm4, %v2071_v3 }
 0x723   : > { %3488 = vmatpush3.bf16.msra.mxu1 %v3956_v50 }
 0x724   : > { %3489 = vmatprep.subr.bf16.mxu1 %v3957_v20 }
 0x727   : > { %v3469_v6 = vpop.f32.mrb[60].mxu1  ;;  %3490 = vmatpush3.bf16.msra.mxu1 %v3957_v20 }
 0x728   : > { %v2056_v7 = vadd.f32 %v3469_v6, %v3168_v51  ;;  %v2047_v8 = vpop.f32.mrb[61].mxu1 }
 0x729   : > { %v2048_v9 = vadd.f32 %v3168_v51, %v2047_v8  ;;  %v3470_v10 = vpop.f32.mrb[62].mxu1 }
 0x72a   : > { %v2059_v11 = vadd.f32 %v3470_v10, %v3168_v51  ;;  %v2050_v12 = vpop.f32.mrb[63].mxu1  ;;  %v2068_v14 = vmax.f32 %v2056_v7, 0.0 }
 0x72b   : > { %v2051_v13 = vadd.f32 %v3168_v51, %v2050_v12  ;;  %v2066_v16 = vmax.f32 %v2048_v9, 0.0  ;;  %v3186_v51 = vld [vmem:[%s4969_s12] ss:$0 sm:$0xff] }
 0x72c   : > { %v2069_v15 = vmax.f32 %v2059_v11, 0.0 }
 0x72d   : > { %v2067_v17 = vmax.f32 %v2051_v13, 0.0 }
 0x72e   : > { %v2073_v18 = vpack.c.bf16 %v2069_v15, %v2068_v14  ;;  %v4075_v15 = vmov 2  }
 0x72f   : > { %v2072_v19 = vpack.c.bf16 %v2067_v17, %v2066_v16 }
 0x731   : > { %3483 = vmatprep.mubr.msk.bf16.mxu1 %vm1500_vm4, %v2072_v19 }
 0x732   : > { %3484 = vmatmul.mubr.msk.bf16.gmra.mrb[68].mxu1 %vm1500_vm4, %v2073_v18 }
 0x7f5   : > { %v3481_v22 = vpop.f32.mrb[64].mxu1 }
 0x7f6   : > { %v2168_v23 = vadd.f32 %v3481_v22, %v3177_v21  ;;  %v2159_v24 = vpop.f32.mrb[65].mxu1 }
 0x7f7   : > { %v2160_v25 = vadd.f32 %v3177_v21, %v2159_v24  ;;  %v3482_v26 = vpop.f32.mrb[66].mxu1 }
 0x7f8   : > { %v2171_v27 = vadd.f32 %v3482_v26, %v3177_v21  ;;  %v2162_v28 = vpop.f32.mrb[67].mxu1  ;;  %v2192_v30 = vmax.f32 %v2168_v23, 0.0 }
 0x7f9   : > { %v2163_v29 = vadd.f32 %v3177_v21, %v2162_v28  ;;  %v2190_v32 = vmax.f32 %v2160_v25, 0.0 }
 0x7fa   : > { %v2193_v31 = vmax.f32 %v2171_v27, 0.0 }
 0x7fb   : > { %v2191_v33 = vmax.f32 %v2163_v29, 0.0 }
 0x7fc   : > { %v2199_v34 = vpack.c.bf16 %v2193_v31, %v2192_v30 }
 0x7fd   : > { %v2198_v35 = vpack.c.bf16 %v2191_v33, %v2190_v32 }
 0x7ff   : > { %3491 = vmatprep.mubr.msk.bf16.mxu1 %vm2225_vm11, %v2198_v35 }
 0x800   : > { %3492 = vmatmul.mubr.msk.bf16.vlgmr.msra.gmra.mrb[72].mxu1 %vm2225_vm11, %v2199_v34 }
 0x805   : > { %v3485_v36 = vpop.f32.mrb[68].mxu1 }
 0x806   : > { %v2184_v37 = vadd.f32 %v3485_v36, %v3177_v21  ;;  %v2175_v38 = vpop.f32.mrb[69].mxu1 }
 0x807   : > { %v2176_v39 = vadd.f32 %v3177_v21, %v2175_v38  ;;  %v3486_v41 = vpop.f32.mrb[70].mxu1 }
 0x808   : > { %v2187_v42 = vadd.f32 %v3486_v41, %v3177_v21  ;;  %v2178_v44 = vpop.f32.mrb[71].mxu1  ;;  %v2196_v45 = vmax.f32 %v2184_v37, 0.0 }
 0x809   : > { %v2179_v40 = vadd.f32 %v3177_v21, %v2178_v44  ;;  %v2194_v46 = vmax.f32 %v2176_v39, 0.0 }
 0x80a   : > { %v2197_v43 = vmax.f32 %v2187_v42, 0.0 }
 0x80b   : > { %v2195_v47 = vmax.f32 %v2179_v40, 0.0 }
 0x80c   : > { %v2201_v48 = vpack.c.bf16 %v2197_v43, %v2196_v45 }
 0x80d   : > { %v2200_v49 = vpack.c.bf16 %v2195_v47, %v2194_v46 }
 0x80f   : > { %3495 = vmatprep.mubr.msk.bf16.mxu1 %vm2225_vm11, %v2200_v49 }
 0x810   : > { %3496 = vmatmul.mubr.msk.bf16.gmra.mrb[76].mxu1 %vm2225_vm11, %v2201_v48 }
 0x811   : > { %3543 = vmatprep.mubr.msk.f32.mxu1 %vm1287_vm0, %v4071_v57 }
 0x8d3   : > { %v3493_v50 = vpop.f32.mrb[72].mxu1 }
 0x8d4   : > { %v2272_v52 = vpop.f32.mrb[73].mxu1  ;;  %v4719_v54 = vadd.f32 %v3493_v50, %v3186_v51 }
 0x8d5   : > { %v3494_v53 = vpop.f32.mrb[74].mxu1  ;;  %v2273_v58 = vadd.f32 %v3186_v51, %v2272_v52 }
 0x8d6   : > { %v2284_v55 = vadd.f32 %v3494_v53, %v3186_v51  ;;  %v2275_v60 = vpop.f32.mrb[75].mxu1 }
 0x8d7   : > { %v4721_v59 = vadd.f32 %v3186_v51, %v2275_v60 }
 0x8d8   : > { %v3613_v61 = vpack.c.bf16 %v2284_v55, %v4719_v54  ;;  %v3754_v62 = vpack.i.bf16 %v2284_v55, %v4719_v54 }
 0x8d9   : > { %v3749_v63 = vpack.i.bf16 %v4721_v59, %v2273_v58  ;;  %v3607_v1 = vpack.c.bf16 %v4721_v59, %v2273_v58 }
 0x8db   : > { %3750 = vrot.lane.b32.xlu0 %v3749_v63, %s4073_s15  ;;  %3745 = vrot.lane.b32.xlu1 %v3749_v63, %s4074_s17 }
 0x8dc   : > { %3609 = vmatprep.subr.msk.bf16.mxu0 %vm4495_vm1, %v3607_v1 }
 0x8dd   : > { %3612 = vmatpush3.bf16.xpose.msk.msra.mxu0 %vm4495_vm1, %v3607_v1 }
 0x8de   : > { %3615 = vmatprep.subr.msk.bf16.mxu0 %vm4495_vm1, %v3613_v61 }
 0x8df   : > { %3755 = vrot.lane.b32.xlu1 %v3754_v62, %s4074_s17 }
 0x8e3   : > { %3760 = vrot.lane.b32.xlu1 %v3754_v62, %s4073_s15  ;;  %v3497_v2 = vpop.f32.mrb[76].mxu1 }
 0x8e4   : > { %v2288_v3 = vpop.f32.mrb[77].mxu1  ;;  %v2297_v6 = vadd.f32 %v3497_v2, %v3186_v51 }
 0x8e5   : > { %3618 = vmatpush3.bf16.xpose.msk.msra.mxu0 %vm4495_vm1, %v3613_v61  ;;  %v3498_v4 = vpop.f32.mrb[78].mxu1  ;;  %v2289_v9 = vadd.f32 %v3186_v51, %v2288_v3 }
 0x8e6   : > { %v2300_v7 = vadd.f32 %v3498_v4, %v3186_v51  ;;  %v2291_v8 = vpop.f32.mrb[79].mxu1 }
 0x8e7   : > { %v2292_v10 = vadd.f32 %v3186_v51, %v2291_v8 }
 0x8e8   : > { %v3625_v11 = vpack.c.bf16 %v2300_v7, %v2297_v6  ;;  %v3779_v12 = vpack.i.bf16 %v2300_v7, %v2297_v6 }
 0x8e9   : > { %v3769_v13 = vpack.i.bf16 %v2292_v10, %v2289_v9  ;;  %v3619_v14 = vpack.c.bf16 %v2292_v10, %v2289_v9 }
 0x8eb   : > { %3770 = vrot.lane.b32.xlu1 %v3769_v13, %s4073_s15  ;;  %3765 = vrot.lane.b32.xlu0 %v3769_v13, %s4074_s17 }
 0x8ec   : > { %3621 = vmatprep.subr.msk.bf16.mxu0 %vm4495_vm1, %v3619_v14 }
 0x8ed   : > { %3624 = vmatpush3.bf16.xpose.msk.msra.mxu0 %vm4495_vm1, %v3619_v14 }
 0x8ee   : > { %3627 = vmatprep.subr.msk.bf16.mxu0 %vm4495_vm1, %v3625_v11 }
 0x8ef   : > { %3780 = vrot.lane.b32.xlu1 %v3779_v12, %s4073_s15  ;;  %3775 = vrot.lane.b32.xlu0 %v3779_v12, %s4074_s17  ;;  %s4010_s15 = sshll.u32 %s4076_s23, 4  ;;  %s4011_s15 = int_to_ptr.vmem [resolvable:$false] %s4010_s15 }
 0x8f0   : > { %s4012_s17 = scalar_lea.vmem %s4011_s15, 2048  ;;  %p4013_p0 = scmp.lt.s32.totalorder %s4910_s22, %s4011_s15 }
 0x8f1   : > { %p4014_p1 = scmp.lt.s32.totalorder %s4012_s17, %s4006_s14 }
 0x8f3   : > { %2437 = vperm.xlu1 %3784, %v4721_v59   ;;  %2630 = vperm.xlu0 %3742, %v4721_v59   ;;  %p4015_p2 = por %p4014_p1, %p4013_p0 }
 0x8f5   : > { %3630 = vmatpush3.bf16.xpose.msk.msra.mxu0 %vm4495_vm1, %v3625_v11  ;;  %p4016_p3 = pnand %p4015_p2, %p4009_p13 }
 0x8f7   : > { %2441 = vperm.xlu1 %3784, %v4719_v54   ;;  %2642 = vperm.xlu0 %3742, %v2289_v9  }
 0x8fb   : > { %2449 = vperm.xlu1 %3784, %v2289_v9   ;;  %2650 = vperm.xlu0 %3742, %v2297_v6  }
 0x8fc   : > { %3516 = vmatmul.mubr.msk.f32.vlgmr.msra.gmra.mrb[16].mxu0 %vm1287_vm0, %v4071_v57 }
 0x8fd   : > { %3518 = vmatprep.mubr.msk.f32.mxu0 %vm1287_vm0, %v4071_v57 }
 0x8ff   : > { %2457 = vperm.xlu1 %3784, %v2297_v6   ;;  %3786 = vset.pattern.permute.xlu0 %v4075_v15 }
 0x900   : > { %3519 = vmatmul.mubr.msk.f32.gmra.mrb[18].mxu0 %vm1287_vm0, %v4071_v57  ;;  %2819 = vperm.xlu0 %3786, %v2273_v58  }
 0x901   : > { %3521 = vmatprep.mubr.msk.f32.mxu0 %vm1287_vm0, %v4071_v57 }
 0x903   : > { %3785 = vset.pattern.permute.xlu1 %v4070_v56 }
 0x904   : > { %3522 = vmatmul.mubr.msk.f32.gmra.mrb[20].mxu0 %vm1287_vm0, %v4071_v57  ;;  %2626 = vperm.xlu1 %3785, %v2273_v58  }
 0x905   : > { %2831 = vperm.xlu0 %3786, %v2284_v55   ;;  %3524 = vmatprep.mubr.msk.f32.mxu0 %vm1287_vm0, %v4071_v57 }
 0x908   : > { %3525 = vmatmul.mubr.msk.f32.gmra.mrb[22].mxu0 %vm1287_vm0, %v4071_v57  ;;  %2634 = vperm.xlu1 %3785, %v4719_v54  }
 0x909   : > { %3788 = vset.pattern.permute.xlu0 %v4072_v5  ;;  %3571 = vmatprep.mubr.msk.f32.mxu0 %vm1287_vm0, %v4071_v57 }
 0x90a   : > { %2433 = vperm.xlu0 %3788, %v2273_v58  }
 0x90c   : > { %2638 = vperm.xlu1 %3785, %v2284_v55  }
 0x90e   : > { %2445 = vperm.xlu0 %3788, %v2284_v55  }
 0x910   : > { %2654 = vperm.xlu1 %3785, %v2300_v7  }
 0x912   : > { %2461 = vperm.xlu0 %3788, %v2300_v7  }
 0x914   : > { %3787 = vset.pattern.permute.xlu1 %v4075_v15 }
 0x915   : > { %2823 = vperm.xlu1 %3787, %v4721_v59  }
 0x916   : > { %2453 = vperm.xlu0 %3788, %v2292_v10  }
 0x919   : > { %2827 = vperm.xlu1 %3787, %v4719_v54  }
 0x91a   : > { %3790 = vset.pattern.permute.xlu0 %v4075_v15 }
 0x91b   : > { %2839 = vperm.xlu0 %3790, %v2292_v10  }
 0x91d   : > { %2835 = vperm.xlu1 %3787, %v2289_v9  }
 0x91f   : > { %2847 = vperm.xlu0 %3790, %v2300_v7  }
 0x921   : > { %3789 = vset.pattern.permute.xlu1 %v4070_v56 }
 0x922   : > { %2646 = vperm.xlu1 %3789, %v2292_v10  }
 0x926   : > { %3791 = vset.pattern.permute.xlu1 %v4075_v15 }
 0x927   : > { %2843 = vperm.xlu1 %3791, %v2297_v6  }
 0x94d   : > { %v3751_v5 = vpop.permute.xlu0 %3750  ;;  %v3746_v16 = vpop.permute.xlu1 %3745 }
 0x94e   : > { %v3753_v17 = vunpack.i.h.bf16 %v3751_v5  ;;  %v3752_v18 = vunpack.i.l.bf16 %v3751_v5  ;;  %v3748_v19 = vunpack.i.h.bf16 %v3746_v16  ;;  %v3747_v20 = vunpack.i.l.bf16 %v3746_v16 }
 0x950   : > { %v3655_v21 = vpack.c.bf16 %v3753_v17, %v3752_v18  ;;  %v3631_v22 = vpack.c.bf16 %v3748_v19, %v3747_v20 }
 0x951   : > { %v3756_v23 = vpop.permute.xlu1 %3755 }
 0x952   : > { %v3758_v24 = vunpack.i.h.bf16 %v3756_v23  ;;  %v3757_v25 = vunpack.i.l.bf16 %v3756_v23  ;;  %3633 = vmatprep.subr.msk.bf16.mxu1 %vm4495_vm1, %v3631_v22  ;;  %3657 = vmatprep.subr.msk.bf16.mxu0 %vm4495_vm1, %v3655_v21 }
 0x953   : > { %3636 = vmatpush3.bf16.xpose.msk.msra.mxu1 %vm4495_vm1, %v3631_v22  ;;  %3660 = vmatpush3.bf16.xpose.msk.msra.mxu0 %vm4495_vm1, %v3655_v21 }
 0x954   : > { %v3637_v56 = vpack.c.bf16 %v3758_v24, %v3757_v25 }
 0x955   : > { %v3761_v26 = vpop.permute.xlu1 %3760 }
 0x956   : > { %v3763_v27 = vunpack.i.h.bf16 %v3761_v26  ;;  %v3762_v28 = vunpack.i.l.bf16 %v3761_v26  ;;  %3639 = vmatprep.subr.msk.bf16.mxu1 %vm4495_vm1, %v3637_v56 }
 0x958   : > { %v3661_v29 = vpack.c.bf16 %v3763_v27, %v3762_v28 }
 0x95a   : > { %3663 = vmatprep.subr.msk.bf16.mxu0 %vm4495_vm1, %v3661_v29 }
 0x95b   : > { %3642 = vmatpush3.bf16.xpose.msk.msra.mxu1 %vm4495_vm1, %v3637_v56  ;;  %3666 = vmatpush3.bf16.xpose.msk.msra.mxu0 %vm4495_vm1, %v3661_v29 }
 0x95d   : > { %v3771_v30 = vpop.permute.xlu1 %3770  ;;  %v3766_v31 = vpop.permute.xlu0 %3765 }
 0x95e   : > { %v3773_v32 = vunpack.i.h.bf16 %v3771_v30  ;;  %v3772_v33 = vunpack.i.l.bf16 %v3771_v30  ;;  %v3768_v34 = vunpack.i.h.bf16 %v3766_v31  ;;  %v3767_v35 = vunpack.i.l.bf16 %v3766_v31 }
 0x960   : > { %v3667_v36 = vpack.c.bf16 %v3773_v32, %v3772_v33  ;;  %v3643_v37 = vpack.c.bf16 %v3768_v34, %v3767_v35 }
 0x961   : > { %v3781_v38 = vpop.permute.xlu1 %3780  ;;  %v3776_v39 = vpop.permute.xlu0 %3775 }
 0x962   : > { %v3783_v41 = vunpack.i.h.bf16 %v3781_v38  ;;  %v3782_v42 = vunpack.i.l.bf16 %v3781_v38  ;;  %v3778_v44 = vunpack.i.h.bf16 %v3776_v39  ;;  %v3777_v40 = vunpack.i.l.bf16 %v3776_v39  ;;  %3645 = vmatprep.subr.msk.bf16.mxu1 %vm4495_vm1, %v3643_v37  ;;  %3669 = vmatprep.subr.msk.bf16.mxu0 %vm4495_vm1, %v3667_v36 }
 0x963   : > { %3648 = vmatpush3.bf16.xpose.msk.msra.mxu1 %vm4495_vm1, %v3643_v37  ;;  %3672 = vmatpush3.bf16.xpose.msk.msra.mxu0 %vm4495_vm1, %v3667_v36 }
 0x964   : > { %v3673_v45 = vpack.c.bf16 %v3783_v41, %v3782_v42  ;;  %v3649_v43 = vpack.c.bf16 %v3778_v44, %v3777_v40 }
 0x966   : > { %3651 = vmatprep.subr.msk.bf16.mxu1 %vm4495_vm1, %v3649_v43  ;;  %3675 = vmatprep.subr.msk.bf16.mxu0 %vm4495_vm1, %v3673_v45 }
 0x96b   : > { %3654 = vmatpush3.bf16.xpose.msk.msra.mxu1 %vm4495_vm1, %v3649_v43  ;;  %3678 = vmatpush3.bf16.xpose.msk.msra.mxu0 %vm4495_vm1, %v3673_v45 }
 0x972   : > { %3544 = vmatmul.mubr.msk.f32.vlgmr.msra.gmra.mrb[80].mxu1 %vm1287_vm0, %v4071_v57  ;;  %3572 = vmatmul.mubr.msk.f32.vlgmr.msra.gmra.mrb[24].mxu0 %vm1287_vm0, %v4071_v57  ;;  %v2438_v53 = vpop.permute.xlu1 %2437  ;;  %v2631_v55 = vpop.permute.xlu0 %2630 }
 0x973   : > { %3546 = vmatprep.mubr.msk.f32.mxu1 %vm1287_vm0, %v4071_v57  ;;  %3574 = vmatprep.mubr.msk.f32.mxu0 %vm1287_vm0, %v4071_v57 }
 0x976   : > { %3547 = vmatmul.mubr.msk.f32.gmra.mrb[82].mxu1 %vm1287_vm0, %v4071_v57  ;;  %3575 = vmatmul.mubr.msk.f32.gmra.mrb[26].mxu0 %vm1287_vm0, %v4071_v57  ;;  %v2442_v54 = vpop.permute.xlu1 %2441  ;;  %v4836_v58 = vpop.permute.xlu0 %2642 }
 0x977   : > { %3549 = vmatprep.mubr.msk.f32.mxu1 %vm1287_vm0, %v4071_v57  ;;  %3577 = vmatprep.mubr.msk.f32.mxu0 %vm1287_vm0, %v4071_v57 }
 0x97a   : > { %3550 = vmatmul.mubr.msk.f32.gmra.mrb[84].mxu1 %vm1287_vm0, %v4071_v57  ;;  %3578 = vmatmul.mubr.msk.f32.gmra.mrb[28].mxu0 %vm1287_vm0, %v4071_v57  ;;  %v2450_v60 = vpop.permute.xlu1 %2449 }
 0x97b   : > { %3552 = vmatprep.mubr.msk.f32.mxu1 %vm1287_vm0, %v4071_v57  ;;  %3580 = vmatprep.mubr.msk.f32.mxu0 %vm1287_vm0, %v4071_v57 }
 0x97e   : > { %3553 = vmatmul.mubr.msk.f32.gmra.mrb[86].mxu1 %vm1287_vm0, %v4071_v57  ;;  %3581 = vmatmul.mubr.msk.f32.gmra.mrb[30].mxu0 %vm1287_vm0, %v4071_v57  ;;  %v4838_v59 = vpop.permute.xlu1 %2457  ;;  %v4840_v57 = vpop.permute.xlu0 %2650 }
 0x982   : > { %v2820_v62 = vpop.permute.xlu0 %2819 }
 0x983   : > { %v2627_v61 = vpop.permute.xlu1 %2626 }
 0x986   : > { %v2832_v1 = vpop.permute.xlu0 %2831 }
 0x987   : > { %v2635_v63 = vpop.permute.xlu1 %2634 }
 0x98a   : > { %v2434_v3 = vpop.permute.xlu0 %2433 }
 0x98b   : > { %v2639_v2 = vpop.permute.xlu1 %2638 }
 0x98e   : > { %v2446_v6 = vpop.permute.xlu0 %2445 }
 0x98f   : > { %v4842_v4 = vpop.permute.xlu1 %2654 }
 0x992   : > { %v2462_v8 = vpop.permute.xlu0 %2461 }
 0x994   : > { %v2824_v7 = vpop.permute.xlu1 %2823 }
 0x996   : > { %v2454_v19 = vpop.permute.xlu0 %2453 }
 0x998   : > { %v2828_v9 = vpop.permute.xlu1 %2827 }
 0x99c   : > { %v2836_v20 = vpop.permute.xlu1 %2835 }
 0x9cf   : > { %v3517_v0 = vpop.f32.mrb[16].mxu0 }
 0x9d0   : > { %v2393_v46 = vpop.f32.mrb[17].mxu0  ;;  %v2465_v10 = vsub.f32 %v2438_v53, %v3517_v0 }
 0x9d1   : > { %v2464_v11 = vsub.f32 %v2434_v3, %v2393_v46 }
 0x9d2   : > { %v2473_v21 = vmul.f32 %v2465_v10, %v2465_v10 }
 0x9d3   : > { %v3520_v47 = vpop.f32.mrb[18].mxu0  ;;  %v2472_v23 = vmul.f32 %v2464_v11, %v2464_v11 }
 0x9d4   : > { %v2403_v48 = vpop.f32.mrb[19].mxu0  ;;  %v2467_v24 = vsub.f32 %v2446_v6, %v3520_v47  ;;  %v2647_v47 = vpop.permute.xlu1 %2646 }
 0x9d5   : > { %v2466_v27 = vsub.f32 %v2442_v54, %v2403_v48 }
 0x9d6   : > { %v2475_v45 = vmul.f32 %v2467_v24, %v2467_v24 }
 0x9d7   : > { %v4828_v49 = vpop.f32.mrb[20].mxu0  ;;  %v2474_v43 = vmul.f32 %v2466_v27, %v2466_v27 }
 0x9d8   : > { %v4830_v50 = vpop.f32.mrb[21].mxu0  ;;  %v2469_v48 = vsub.f32 %v2454_v19, %v4828_v49 }
 0x9d9   : > { %v2468_v53 = vsub.f32 %v2450_v60, %v4830_v50 }
 0x9db   : > { %v4832_v51 = vpop.f32.mrb[22].mxu0 }
 0x9dc   : > { %v4834_v52 = vpop.f32.mrb[23].mxu0 }
 0xa45   : > { %v3545_v12 = vpop.f32.mrb[80].mxu1  ;;  %v3573_v13 = vpop.f32.mrb[24].mxu0 }
 0xa46   : > { %v2658_v14 = vsub.f32 %v2631_v55, %v3545_v12  ;;  %v2851_v15 = vsub.f32 %v2824_v7, %v3573_v13  ;;  %v2586_v5 = vpop.f32.mrb[81].mxu1  ;;  %v2779_v16 = vpop.f32.mrb[25].mxu0  ;;  %v2470_v13 = vsub.f32 %v4838_v59, %v4834_v52 }
 0xa47   : > { %v2657_v17 = vsub.f32 %v2627_v61, %v2586_v5  ;;  %v2850_v18 = vsub.f32 %v2820_v62, %v2779_v16  ;;  %v2840_v55 = vpop.permute.xlu0 %2839 }
 0xa48   : > { %v2666_v22 = vmul.f32 %v2658_v14, %v2658_v14  ;;  %v2859_v29 = vmul.f32 %v2851_v15, %v2851_v15  ;;  %v2476_v15 = vmul.f32 %v2468_v53, %v2468_v53 }
 0xa49   : > { %v2665_v25 = vmul.f32 %v2657_v17, %v2657_v17  ;;  %v3548_v56 = vpop.f32.mrb[82].mxu1  ;;  %v3576_v26 = vpop.f32.mrb[26].mxu0  ;;  %v2858_v34 = vmul.f32 %v2850_v18, %v2850_v18 }
 0xa4a   : > { %v2674_v28 = vadd.f32 %v2666_v22, %v2473_v21  ;;  %v2660_v30 = vsub.f32 %v2639_v2, %v3548_v56  ;;  %v2596_v31 = vpop.f32.mrb[83].mxu1  ;;  %v2789_v32 = vpop.f32.mrb[27].mxu0  ;;  %v2853_v35 = vsub.f32 %v2832_v1, %v3576_v26  ;;  %v2471_v2 = vsub.f32 %v2462_v8, %v4832_v51 }
 0xa4b   : > { %v2673_v33 = vadd.f32 %v2665_v25, %v2472_v23  ;;  %v2659_v36 = vsub.f32 %v2635_v63, %v2596_v31  ;;  %v2852_v39 = vsub.f32 %v2828_v9, %v2789_v32  ;;  %v2477_v8 = vmul.f32 %v2469_v48, %v2469_v48  ;;  %v2848_v16 = vpop.permute.xlu0 %2847  ;;  %v2844_v56 = vpop.permute.xlu1 %2843 }
 0xa4c   : > { %v4844_v37 = vadd.f32 %v2859_v29, %v2674_v28  ;;  %v2668_v38 = vmul.f32 %v2660_v30, %v2660_v30  ;;  %v2861_v54 = vmul.f32 %v2853_v35, %v2853_v35  ;;  %v2478_v21 = vmul.f32 %v2470_v13, %v2470_v13 }
 0xa4d   : > { %v4846_v41 = vadd.f32 %v2858_v34, %v2673_v33  ;;  %v2667_v42 = vmul.f32 %v2659_v36, %v2659_v36  ;;  %v3551_v44 = vpop.f32.mrb[84].mxu1  ;;  %v3579_v40 = vpop.f32.mrb[28].mxu0  ;;  %v2860_v63 = vmul.f32 %v2852_v39, %v2852_v39 }
 0xa4e   : > { %3990 = vrsqrt.f32 %v4844_v37  ;;  %v2606_v0 = vpop.f32.mrb[85].mxu1  ;;  %v2799_v46 = vpop.f32.mrb[29].mxu0  ;;  %v2676_v61 = vadd.f32 %v2668_v38, %v2475_v45  ;;  %v2662_v1 = vsub.f32 %v2647_v47, %v3551_v44  ;;  %v2855_v3 = vsub.f32 %v2840_v55, %v3579_v40 }
 0xa4f   : > { %3992 = vrsqrt.f32 %v4846_v41  ;;  %v2675_v62 = vadd.f32 %v2667_v42, %v2474_v43  ;;  %v2661_v6 = vsub.f32 %v4836_v58, %v2606_v0  ;;  %v2854_v60 = vsub.f32 %v2836_v20, %v2799_v46 }
 0xa50   : > { %v4854_v10 = vadd.f32 %v2861_v54, %v2676_v61  ;;  %v2670_v50 = vmul.f32 %v2662_v1, %v2662_v1  ;;  %v2479_v58 = vmul.f32 %v2471_v2, %v2471_v2  ;;  %v2863_v5 = vmul.f32 %v2855_v3, %v2855_v3 }
 0xa51   : > { %v3554_v7 = vpop.f32.mrb[86].mxu1  ;;  %v3582_v9 = vpop.f32.mrb[30].mxu0  ;;  %v4856_v49 = vadd.f32 %v2860_v63, %v2675_v62  ;;  %v2669_v14 = vmul.f32 %v2661_v6, %v2661_v6  ;;  %v2862_v19 = vmul.f32 %v2854_v60, %v2854_v60  ;;  %vm2883_vm12 = vcmp.eq.f32.partialorder %v4844_v37, inf }
 0xa52   : > { %v2616_v11 = vpop.f32.mrb[87].mxu1  ;;  %v2809_v12 = vpop.f32.mrb[31].mxu0  ;;  %v2664_v51 = vsub.f32 %v4842_v4, %v3554_v7  ;;  %3994 = vrsqrt.f32 %v4854_v10  ;;  %v2678_v17 = vadd.f32 %v2670_v50, %v2477_v8  ;;  %v2857_v52 = vsub.f32 %v2848_v16, %v3582_v9 }
 0xa53   : > { %3996 = vrsqrt.f32 %v4856_v49  ;;  %v2677_v18 = vadd.f32 %v2669_v14, %v2476_v15  ;;  %v2663_v59 = vsub.f32 %v4840_v57, %v2616_v11  ;;  %vm2885_vm13 = vcmp.eq.f32.partialorder %v4844_v37, 0.0 }
 0xa54   : > { %v2672_v20 = vmul.f32 %v2664_v51, %v2664_v51  ;;  %v2871_v22 = vadd.f32 %v2863_v5, %v2678_v17  ;;  %v2886_v27 = vand.u32 2147483648, %v4844_v37  ;;  %vm2876_vm14 = vcmp.eq.f32.partialorder %v4846_v41, inf }
 0xa55   : > { %v2870_v23 = vadd.f32 %v2862_v19, %v2677_v18  ;;  %v2671_v28 = vmul.f32 %v2663_v59, %v2663_v59  ;;  %v2856_v57 = vsub.f32 %v2844_v56, %v2809_v12  ;;  %v2879_v31 = vand.u32 2147483648, %v4846_v41 }
 0xa56   : > { %v2680_v24 = vadd.f32 %v2672_v20, %v2479_v58  ;;  %3998 = vrsqrt.f32 %v2871_v22  ;;  %v2865_v32 = vmul.f32 %v2857_v52, %v2857_v52  ;;  %vm2878_vm15 = vcmp.eq.f32.partialorder %v4846_v41, 0.0 }
 0xa57   : > { %4000 = vrsqrt.f32 %v2870_v23  ;;  %v2679_v38 = vadd.f32 %v2671_v28, %v2478_v21  ;;  %vm2897_vm0 = vcmp.eq.f32.partialorder %v4854_v10, inf  ;;  %vm2899_vm1 = vcmp.eq.f32.partialorder %v4854_v10, 0.0 }
 0xa58   : > { %v3991_v4 = vpop.eup %3990  ;;  %v2873_v36 = vadd.f32 %v2865_v32, %v2680_v24  ;;  %vm2890_vm2 = vcmp.eq.f32.partialorder %v4856_v49, inf  ;;  %v2893_v0 = vand.u32 2147483648, %v4856_v49  ;;  %vm2892_vm3 = vcmp.eq.f32.partialorder %v4856_v49, 0.0 }
 0xa59   : > { %v3993_v25 = vpop.eup %3992  ;;  %v2882_v26 = vmul.f32 %v3991_v4, %v4844_v37  ;;  %vm2911_vm5 = vcmp.eq.f32.partialorder %v2871_v22, inf  ;;  %v2914_v61 = vand.u32 2147483648, %v2871_v22  ;;  %vm2913_vm6 = vcmp.eq.f32.partialorder %v2871_v22, 0.0 }
 0xa5a   : > { %v2875_v29 = vmul.f32 %v3993_v25, %v4846_v41  ;;  %4002 = vrsqrt.f32 %v2873_v36  ;;  %vm2904_vm7 = vcmp.eq.f32.partialorder %v2870_v23, inf  ;;  %v2907_v1 = vand.u32 2147483648, %v2870_v23 }
 0xa5b   : > { %v2884_v30 = vsel %vm2883_vm12, %v4844_v37, %v2882_v26  ;;  %v2864_v37 = vmul.f32 %v2856_v57, %v2856_v57  ;;  %vm2906_vm8 = vcmp.eq.f32.partialorder %v2870_v23, 0.0  ;;  %vm2925_vm9 = vcmp.eq.f32.partialorder %v2873_v36, inf }
 0xa5c   : > { %v2887_v33 = vsel %vm2885_vm13, %v2886_v27, %v2884_v30  ;;  %v2877_v34 = vsel %vm2876_vm14, %v4846_v41, %v2875_v29  ;;  %v3995_v39 = vpop.eup %3994  ;;  %v2900_v41 = vand.u32 2147483648, %v4854_v10  ;;  %vm2927_vm10 = vcmp.eq.f32.partialorder %v2873_v36, 0.0 }
 0xa5d   : > { %2931 = vst.msk [vmem:[%s4877_s21 + $0x8] sm:$0xff] %vm1500_vm4, %v2887_v33  ;;  %v2880_v35 = vsel %vm2878_vm15, %v2879_v31, %v2877_v34  ;;  %v3997_v42 = vpop.eup %3996  ;;  %v2896_v44 = vmul.f32 %v3995_v39, %v4854_v10  ;;  %v2872_v45 = vadd.f32 %v2864_v37, %v2679_v38 }
 0xa5e   : > { %2930 = vst.msk [vmem:[%s4877_s21] sm:$0xff] %vm1500_vm4, %v2880_v35  ;;  %v2889_v40 = vmul.f32 %v3997_v42, %v4856_v49 }
 0xa5f   : > { %v2898_v43 = vsel %vm2897_vm0, %v4854_v10, %v2896_v44  ;;  %4004 = vrsqrt.f32 %v2872_v45  ;;  %v2928_v10 = vand.u32 2147483648, %v2873_v36  ;;  %vm2918_vm11 = vcmp.eq.f32.partialorder %v2872_v45, inf }
 0xa60   : > { %v2901_v46 = vsel %vm2899_vm1, %v2900_v41, %v2898_v43  ;;  %v2891_v47 = vsel %vm2890_vm2, %v4856_v49, %v2889_v40  ;;  %v3999_v53 = vpop.eup %3998  ;;  %v2921_v12 = vand.u32 2147483648, %v2872_v45  ;;  %vm2920_vm12 = vcmp.eq.f32.partialorder %v2872_v45, 0.0 }
 0xa61   : > { %2933 = vst.msk [vmem:[%s4877_s21 + $0x18] sm:$0xff] %vm1500_vm4, %v2901_v46  ;;  %v2894_v48 = vsel %vm2892_vm3, %v2893_v0, %v2891_v47  ;;  %v4001_v54 = vpop.eup %4000  ;;  %v2910_v55 = vmul.f32 %v3999_v53, %v2871_v22 }
 0xa62   : > { %2932 = vst.msk [vmem:[%s4877_s21 + $0x10] sm:$0xff] %vm1500_vm4, %v2894_v48  ;;  %v2903_v62 = vmul.f32 %v4001_v54, %v2870_v23 }
 0xa63   : > { %v2912_v63 = vsel %vm2911_vm5, %v2871_v22, %v2910_v55 }
 0xa64   : > { %v2915_v2 = vsel %vm2913_vm6, %v2914_v61, %v2912_v63  ;;  %v2905_v3 = vsel %vm2904_vm7, %v2870_v23, %v2903_v62  ;;  %v4003_v6 = vpop.eup %4002 }
 0xa65   : > { %2935 = vst.msk [vmem:[%s4877_s21 + $0x28] sm:$0xff] %vm1500_vm4, %v2915_v2  ;;  %v2908_v7 = vsel %vm2906_vm8, %v2907_v1, %v2905_v3  ;;  %v2924_v9 = vmul.f32 %v4003_v6, %v2873_v36 }
 0xa66   : > { %2934 = vst.msk [vmem:[%s4877_s21 + $0x20] sm:$0xff] %vm1500_vm4, %v2908_v7 }
 0xa67   : > { %v2926_v50 = vsel %vm2925_vm9, %v2873_v36, %v2924_v9 }
 0xa68   : > { %v2929_v60 = vsel %vm2927_vm10, %v2928_v10, %v2926_v50 }
 0xa69   : > { %v4005_v49 = vpop.eup %4004  ;;  %2937 = vst.msk [vmem:[%s4877_s21 + $0x38] sm:$0xff] %vm1500_vm4, %v2929_v60 }
 0xa6a   : > { %v2917_v11 = vmul.f32 %v4005_v49, %v2872_v45 }
 0xa6c   : > { %v2919_v13 = vsel %vm2918_vm11, %v2872_v45, %v2917_v11 }
 0xa6d   : > { %v2922_v14 = vsel %vm2920_vm12, %v2921_v12, %v2919_v13 }
 0xa6e   : > { %2936 = vst.msk [vmem:[%s4877_s21 + $0x30] sm:$0xff] %vm1500_vm4, %v2922_v14 }
 0xa6f   : > { %4019 = shalt.err (!%p4016_p3)
}
 0xa70   : > { %s4020_s16 = scalar_lea.hbm %s4908_s30, 1024  ;;  %s4024_s27 = scalar_lea.hbm %s4970_s13, 2048 }
 0xa71   : > { %p4021_p4 = scmp.ne.s32.totalorder %s4908_s30, %s4020_s16  ;;  %p4025_p9 = scmp.lt.u32.totalorder %s4908_s30, %s4970_s13 }
 0xa72   : > { %p4026_p10 = scmp.lt.u32.totalorder %s4024_s27, %s4020_s16  ;;  %p4028_p12 = scmp.lt.u32.totalorder %s4020_s16, %s4908_s30 }
 0xa73   : > { %p4022_p7 = pnand %p4021_p4, %p4187_p5 }
 0xa74   : > { %p4027_p11 = por %p4026_p10, %p4025_p9 }
 0xa75   : > { %p4023_p8 = pneg %p4022_p7 }
 0xa76   : > { %p4029_p13 = por %p4028_p12, %p4027_p11 }
 0xa78   : > { %p4030_p0 = pnand %p4029_p13, %p4023_p8 }
 0xa7a   : > { %4033 = shalt.err (!%p4030_p0)
}
 0xa7b   : > { %s4077_s14 = smov 128   ;;  %s4078_s23 = smov 8  }
 0xa7c   : > { %3695 = dma.vmem_to_hbm [thread:$0]  (%p4187_p5), %s4910_s22, 1024, %s4908_s30, %s4916_s29, %s4077_s14, %s4077_s14, %s4078_s23  }
 0xa7d PF: > { %p3701_p1 = scmp.ge.s32.totalorder %s4068_s28, 2  ;;  %s2967_s15 = sand.u32 1, %s4056_s25  }
 0xa7e   : > { %s2968_s17 = scalar_lea.sflag [#allocation3], %s2967_s15 }
 0xa7f   : > { %p3698_p2 = pnand %p3701_p1, %p4191_p6 }
 0xa81   : > { %4051 = dma.done.wait (!%p3698_p2), %s2968_s17, 1024  }
 0xa82   : > { %4053 = vsyncadd (!%p3698_p2), %s2968_s17, 4294966272  ;;  %s4983_s28 = sld [smem:[#allocation6_spill]]  ;;  %s4984_s16 = sld [smem:[#allocation5_spill]] }
 0xa83   : > { %s4985_s27 = sld [smem:[#allocation7_spill]]  ;;  %s4986_s25 = smov %s4060_s26 }
 0xa88   : > { %p23_p3 = scmp.ge.s32.totalorder %s4983_s28, 4   ;;  %s4987_s26 = smov %s4984_s16 }
 0xa8a   :  { %25 = sbr.rel (!%p23_p3) target bundleno = 5 (0x5), region = 110 }
 0xa91   :  { %2973 = vsyncpa [#allocation3], 1 }
 0xa92   :  { %2975 = vsyncpa [#allocation3 + $0x1], 1 }

</bundles_post_ra>
